<compile_context>
chip_gen: v7x
topology: tpu7x:2x2x1
jax: 0.10.0
libtpu: 0.0.40
codegen_flags: <defaults>
</compile_context>

<pallas_src>
import jax
import jax.numpy as jnp
from jax.experimental import pallas as pl
from jax.experimental.pallas import tpu as pltpu

# ---------------- small synthetic config (stands in for deberta-v2-xlarge) ----------------
B, S = 2, 8          # batch, sequence
H = 32               # hidden size
NH, DH = 4, 8        # heads, head dim  (NH * DH == H)
FFN = 64             # intermediate size
LAYERS = 2           # encoder layers
VOCAB = 100
INIT_RANGE = 0.02
LN_EPS = 1e-7
NEG_INF = -1e9


def _layernorm(x, g, b):
    # two-pass statistics (safer than E[x^2]-mu^2 at real activation magnitudes)
    mu = jnp.mean(x, axis=-1, keepdims=True)
    xc = x - mu
    var = jnp.mean(xc * xc, axis=-1, keepdims=True)
    return xc * jax.lax.rsqrt(var + LN_EPS) * g + b


# ---------------------------------- fused forward kernel ----------------------------------
# grid = (B, LAYERS); one program = one encoder layer for one example.
def _forward_kernel(mask_ref, x_ref, eg_ref, eb_ref,
                    wq_ref, wk_ref, wv_ref, bq_ref, bk_ref, bv_ref,
                    wo_ref, bo_ref, ln1g_ref, ln1b_ref,
                    w1_ref, b1_ref, w2_ref, b2_ref, ln2g_ref, ln2b_ref,
                    fcw_ref, fcb_ref, out_ref, x_state):
    f32 = jnp.float32
    bf16 = jnp.bfloat16
    l = pl.program_id(1)

    # ---- layer 0: load this example's embeddings, apply embedding LayerNorm ----
    @pl.when(l == 0)
    def _():
        x_state[...] = _layernorm(x_ref[0].astype(f32), eg_ref[...], eb_ref[...])

    # key-padding additive bias, [1, S]; broadcasts over the query axis.
    bias = jnp.where(mask_ref[0] > 0, f32(0.0), f32(NEG_INF))

    x = x_state[...]                       # [S, H] f32, resident across layer steps
    xb = x.astype(bf16)                    # bf16 operand for the MXU
    scale = 1.0 / (float(DH) ** 0.5)
    nt = (((1,), (1,)), ((), ()))          # contract last dims: a @ b.T

    # ---- self-attention: head-major weights, per-head output accumulated into attn ----
    attn = jnp.zeros((S, H), f32)
    for h in range(NH):                    # static unroll; leading-axis slices only
        q = jnp.dot(xb, wq_ref[0, h], preferred_element_type=f32) + bq_ref[0, h]  # [S, DH]
        k = jnp.dot(xb, wk_ref[0, h], preferred_element_type=f32) + bk_ref[0, h]
        v = jnp.dot(xb, wv_ref[0, h], preferred_element_type=f32) + bv_ref[0, h]
        s = jax.lax.dot_general(q, k, nt, preferred_element_type=f32) * scale + bias
        m = jnp.max(s, axis=-1, keepdims=True)
        e = jnp.exp(s - m)                 # max-subtraction => denom >= 1 (no inf/NaN)
        p = e * pl.reciprocal(jnp.sum(e, axis=-1, keepdims=True), approx=True)
        ctx = jnp.dot(p.astype(bf16), v.astype(bf16), preferred_element_type=f32)  # [S, DH]
        # concat-free output projection: sum_h ctx_h @ Wo[h]  ( == concat(ctx) @ Wo )
        attn = attn + jnp.dot(ctx.astype(bf16), wo_ref[0, h], preferred_element_type=f32)
    attn = attn + bo_ref[0]

    # residual + LN1
    x = _layernorm(attn + x, ln1g_ref[0], ln1b_ref[0])

    # FFN (gelu) + residual + LN2
    h_mid = jnp.dot(x.astype(bf16), w1_ref[0], preferred_element_type=f32) + b1_ref[0]
    h_mid = jax.nn.gelu(h_mid, approximate=True)   # TODO(synk): exact erf GELU in HF
    h_out = jnp.dot(h_mid.astype(bf16), w2_ref[0], preferred_element_type=f32) + b2_ref[0]
    x = _layernorm(h_out + x, ln2g_ref[0], ln2b_ref[0])
    x_state[...] = x

    # ---- last layer: classifier H -> 1, emitted as a lane-dense row [1, S] ----
    @pl.when(l == pl.num_programs(1) - 1)
    def _():
        logits = jax.lax.dot_general(fcw_ref[...], x, nt,
                                     preferred_element_type=f32) + fcb_ref[...]
        out_ref[0] = logits.astype(out_ref.dtype)


# ---------------------------------- BlockSpec helpers ----------------------------------
def _batch_spec(shape):      # block varies with batch index b, constant over l
    nd = len(shape)
    return pl.BlockSpec((1,) + tuple(shape[1:]), lambda b, l: (b,) + (0,) * (nd - 1))


def _layer_spec(shape):      # block varies with layer index l (streamed weights)
    nd = len(shape)
    return pl.BlockSpec((1,) + tuple(shape[1:]), lambda b, l: (l,) + (0,) * (nd - 1))


def _const_spec(shape):      # same block for every program (fetched once)
    nd = len(shape)
    return pl.BlockSpec(tuple(shape), lambda b, l: (0,) * nd)


def forward_pallas(params, input_ids, attention_mask):
    # embedding gather stays in XLA (tiny); everything downstream is one kernel
    tok = jnp.take(params["word_emb"], input_ids, axis=0)                   # [B, S, H]
    x_emb = tok + params["pos_emb"][None, :, :]                             # [B, S, H]
    mask = attention_mask.reshape(B, 1, S).astype(jnp.int32)                # [B, 1, S]

    args = (mask, x_emb,
            params["emb_ln_g"], params["emb_ln_b"],
            params["wq"], params["wk"], params["wv"],
            params["bq"], params["bk"], params["bv"],
            params["wo"], params["bo"],
            params["ln1_g"], params["ln1_b"],
            params["w1"], params["b1"], params["w2"], params["b2"],
            params["ln2_g"], params["ln2_b"],
            params["fc_w"], params["fc_b"])

    in_specs = [
        _batch_spec(mask.shape),
        _batch_spec(x_emb.shape),
        _const_spec(params["emb_ln_g"].shape),
        _const_spec(params["emb_ln_b"].shape),
    ] + [_layer_spec(params[k].shape) for k in (
        "wq", "wk", "wv", "bq", "bk", "bv", "wo", "bo",
        "ln1_g", "ln1_b", "w1", "b1", "w2", "b2", "ln2_g", "ln2_b")] + [
        _const_spec(params["fc_w"].shape),
        _const_spec(params["fc_b"].shape),
    ]

    out = pl.pallas_call(
        _forward_kernel,
        out_shape=jax.ShapeDtypeStruct((B, 1, S), jnp.float32),
        grid=(B, LAYERS),
        in_specs=in_specs,
        out_specs=pl.BlockSpec((1, 1, S), lambda b, l: (b, 0, 0)),
        scratch_shapes=[pltpu.VMEM((S, H), jnp.float32)],   # activation carried across layers
        compiler_params=pltpu.CompilerParams(
            dimension_semantics=("parallel", "arbitrary"),
            vmem_limit_bytes=32 * 1024 * 1024),
    )(*args)
    # dropout(p) in eval mode == identity; .squeeze(-1) -> [B, S]
    return out.reshape(B, S)


# ---------------------------------- params ----------------------------------
def init_params(key):
    def nrm(k, shape):
        return jax.random.normal(k, shape, jnp.float32) * INIT_RANGE

    keys = iter(jax.random.split(key, 12))
    # standard [H, H] projections, then a free host-side head-major permutation:
    #   wq/wk/wv: [L, H, H] -> [L, NH, H, DH]   (x -> per-head DH)
    #   wo      : [L, H, H] -> [L, NH, DH, H]   (per-head DH -> H, accumulated over heads)
    wq = nrm(next(keys), (LAYERS, H, H))
    wk = nrm(next(keys), (LAYERS, H, H))
    wv = nrm(next(keys), (LAYERS, H, H))
    wo = nrm(next(keys), (LAYERS, H, H))
    to_head_in = lambda w: w.reshape(LAYERS, H, NH, DH).transpose(0, 2, 1, 3)
    bf16 = jnp.bfloat16
    return {
        "word_emb": nrm(next(keys), (VOCAB, H)),
        "pos_emb": nrm(next(keys), (S, H)),
        "emb_ln_g": jnp.ones((1, H), jnp.float32),
        "emb_ln_b": jnp.zeros((1, H), jnp.float32),
        # big matmul weights stored bf16 in HBM (halved DMA bytes, native MXU bf16)
        "wq": to_head_in(wq).astype(bf16),
        "wk": to_head_in(wk).astype(bf16),
        "wv": to_head_in(wv).astype(bf16),
        "bq": jnp.zeros((LAYERS, NH, 1, DH), jnp.float32),
        "bk": jnp.zeros((LAYERS, NH, 1, DH), jnp.float32),
        "bv": jnp.zeros((LAYERS, NH, 1, DH), jnp.float32),
        "wo": wo.reshape(LAYERS, NH, DH, H).astype(bf16),
        "bo": jnp.zeros((LAYERS, 1, H), jnp.float32),
        "ln1_g": jnp.ones((LAYERS, 1, H), jnp.float32),
        "ln1_b": jnp.zeros((LAYERS, 1, H), jnp.float32),
        "w1": nrm(next(keys), (LAYERS, H, FFN)).astype(bf16),
        "b1": jnp.zeros((LAYERS, 1, FFN), jnp.float32),
        "w2": nrm(next(keys), (LAYERS, FFN, H)).astype(bf16),
        "b2": jnp.zeros((LAYERS, 1, H), jnp.float32),
        "ln2_g": jnp.ones((LAYERS, 1, H), jnp.float32),
        "ln2_b": jnp.zeros((LAYERS, 1, H), jnp.float32),
        # nn.Linear(hidden_size, 1): normal(0, initializer_range) weight, zero bias
        "fc_w": nrm(next(keys), (1, H)),
        "fc_b": jnp.zeros((1, 1), jnp.float32),
    }


if __name__ == "__main__":
    key = jax.random.PRNGKey(0)
    k_param, k_ids = jax.random.split(key)
    params = init_params(k_param)

    input_ids = jax.random.randint(k_ids, (B, S), 0, VOCAB, dtype=jnp.int32)
    attention_mask = jnp.ones((B, S), jnp.int32).at[1, 6:].set(0)  # pad tail of 2nd example

    logits = jax.jit(forward_pallas)(params, input_ids, attention_mask)
    jax.block_until_ready(logits)
    assert logits.shape == (B, S) and logits.dtype == jnp.float32
    print("KERNEL_OK")
</pallas_src>

<mosaic_0001>
module attributes {stable_mosaic.version = 11 : i64} {
  func.func @_forward_kernel(%arg0: i32, %arg1: i32, %arg2: memref<1x1x8xi32, #tpu.memory_space<vmem>>, %arg3: memref<1x8x32xf32, #tpu.memory_space<vmem>>, %arg4: memref<1x32xf32, #tpu.memory_space<vmem>>, %arg5: memref<1x32xf32, #tpu.memory_space<vmem>>, %arg6: memref<1x4x32x8xbf16, #tpu.memory_space<vmem>>, %arg7: memref<1x4x32x8xbf16, #tpu.memory_space<vmem>>, %arg8: memref<1x4x32x8xbf16, #tpu.memory_space<vmem>>, %arg9: memref<1x4x1x8xf32, #tpu.memory_space<vmem>>, %arg10: memref<1x4x1x8xf32, #tpu.memory_space<vmem>>, %arg11: memref<1x4x1x8xf32, #tpu.memory_space<vmem>>, %arg12: memref<1x4x8x32xbf16, #tpu.memory_space<vmem>>, %arg13: memref<1x1x32xf32, #tpu.memory_space<vmem>>, %arg14: memref<1x1x32xf32, #tpu.memory_space<vmem>>, %arg15: memref<1x1x32xf32, #tpu.memory_space<vmem>>, %arg16: memref<1x32x64xbf16, #tpu.memory_space<vmem>>, %arg17: memref<1x1x64xf32, #tpu.memory_space<vmem>>, %arg18: memref<1x64x32xbf16, #tpu.memory_space<vmem>>, %arg19: memref<1x1x32xf32, #tpu.memory_space<vmem>>, %arg20: memref<1x1x32xf32, #tpu.memory_space<vmem>>, %arg21: memref<1x1x32xf32, #tpu.memory_space<vmem>>, %arg22: memref<1x32xf32, #tpu.memory_space<vmem>>, %arg23: memref<1x1xf32, #tpu.memory_space<vmem>>, %arg24: memref<1x1x8xf32, #tpu.memory_space<vmem>>, %arg25: memref<8x32xf32, #tpu.memory_space<vmem>>) attributes {dimension_semantics = [#tpu.dimension_semantics<parallel>, #tpu.dimension_semantics<arbitrary>], iteration_bounds = array<i64: 2, 2>, scalar_prefetch = 0 : i64, scratch_operands = 1 : i64, tpu.core_type = #tpu.core_type<tc>, window_params = [{transform_indices = @transform_0, window_bounds = array<i64: 1, 1, 8>}, {transform_indices = @transform_1, window_bounds = array<i64: 1, 8, 32>}, {pipeline_mode = #tpu.pipeline_mode<synchronous>, transform_indices = @transform_2, window_bounds = array<i64: 1, 32>}, {pipeline_mode = #tpu.pipeline_mode<synchronous>, transform_indices = @transform_3, window_bounds = array<i64: 1, 32>}, {transform_indices = @transform_4, window_bounds = array<i64: 1, 4, 32, 8>}, {transform_indices = @transform_5, window_bounds = array<i64: 1, 4, 32, 8>}, {transform_indices = @transform_6, window_bounds = array<i64: 1, 4, 32, 8>}, {transform_indices = @transform_7, window_bounds = array<i64: 1, 4, 1, 8>}, {transform_indices = @transform_8, window_bounds = array<i64: 1, 4, 1, 8>}, {transform_indices = @transform_9, window_bounds = array<i64: 1, 4, 1, 8>}, {transform_indices = @transform_10, window_bounds = array<i64: 1, 4, 8, 32>}, {transform_indices = @transform_11, window_bounds = array<i64: 1, 1, 32>}, {transform_indices = @transform_12, window_bounds = array<i64: 1, 1, 32>}, {transform_indices = @transform_13, window_bounds = array<i64: 1, 1, 32>}, {transform_indices = @transform_14, window_bounds = array<i64: 1, 32, 64>}, {transform_indices = @transform_15, window_bounds = array<i64: 1, 1, 64>}, {transform_indices = @transform_16, window_bounds = array<i64: 1, 64, 32>}, {transform_indices = @transform_17, window_bounds = array<i64: 1, 1, 32>}, {transform_indices = @transform_18, window_bounds = array<i64: 1, 1, 32>}, {transform_indices = @transform_19, window_bounds = array<i64: 1, 1, 32>}, {pipeline_mode = #tpu.pipeline_mode<synchronous>, transform_indices = @transform_20, window_bounds = array<i64: 1, 32>}, {pipeline_mode = #tpu.pipeline_mode<synchronous>, transform_indices = @transform_21, window_bounds = array<i64: 1, 1>}, {transform_indices = @transform_22, window_bounds = array<i64: 1, 1, 8>}]} {
    %c0_i32 = arith.constant 0 : i32
    %0 = arith.cmpi eq, %arg1, %c0_i32 : i32
    %1 = arith.extui %0 : i1 to i32
    %c0_i32_0 = arith.constant 0 : i32
    %2 = arith.cmpi ne, %1, %c0_i32_0 : i32
    scf.if %2 {
      %c0_199 = arith.constant 0 : index
      %c0_200 = arith.constant 0 : index
      %c0_201 = arith.constant 0 : index
      %276 = vector.load %arg3[%c0_199, %c0_200, %c0_201] : memref<1x8x32xf32, #tpu.memory_space<vmem>>, vector<1x8x32xf32>
      %277 = vector.shape_cast %276 : vector<1x8x32xf32> to vector<8x32xf32>
      %c0_202 = arith.constant 0 : index
      %c0_203 = arith.constant 0 : index
      %278 = vector.load %arg4[%c0_202, %c0_203] : memref<1x32xf32, #tpu.memory_space<vmem>>, vector<1x32xf32>
      %c0_204 = arith.constant 0 : index
      %c0_205 = arith.constant 0 : index
      %279 = vector.load %arg5[%c0_204, %c0_205] : memref<1x32xf32, #tpu.memory_space<vmem>>, vector<1x32xf32>
      %cst_206 = arith.constant dense<0.000000e+00> : vector<8xf32>
      %280 = vector.multi_reduction <add>, %277, %cst_206 [1] : vector<8x32xf32> to vector<8xf32>
      %281 = vector.shape_cast %280 : vector<8xf32> to vector<8x1xf32>
      %cst_207 = arith.constant 3.200000e+01 : f32
      %282 = vector.broadcast %cst_207 : f32 to vector<8x1xf32>
      %283 = arith.divf %281, %282 : vector<8x1xf32>
      %284 = vector.broadcast %283 : vector<8x1xf32> to vector<8x32xf32>
      %285 = arith.subf %277, %284 : vector<8x32xf32>
      %286 = arith.mulf %285, %285 : vector<8x32xf32>
      %cst_208 = arith.constant dense<0.000000e+00> : vector<8xf32>
      %287 = vector.multi_reduction <add>, %286, %cst_208 [1] : vector<8x32xf32> to vector<8xf32>
      %288 = vector.shape_cast %287 : vector<8xf32> to vector<8x1xf32>
      %cst_209 = arith.constant 3.200000e+01 : f32
      %289 = vector.broadcast %cst_209 : f32 to vector<8x1xf32>
      %290 = arith.divf %288, %289 : vector<8x1xf32>
      %cst_210 = arith.constant 1.000000e-07 : f32
      %291 = vector.broadcast %cst_210 : f32 to vector<8x1xf32>
      %292 = arith.addf %290, %291 : vector<8x1xf32>
      %293 = math.rsqrt %292 : vector<8x1xf32>
      %294 = vector.broadcast %293 : vector<8x1xf32> to vector<8x32xf32>
      %295 = arith.mulf %285, %294 : vector<8x32xf32>
      %296 = vector.broadcast %278 : vector<1x32xf32> to vector<8x32xf32>
      %297 = arith.mulf %295, %296 : vector<8x32xf32>
      %298 = vector.broadcast %279 : vector<1x32xf32> to vector<8x32xf32>
      %299 = arith.addf %297, %298 : vector<8x32xf32>
      %c0_211 = arith.constant 0 : index
      %c0_212 = arith.constant 0 : index
      %300 = vector.load %arg25[%c0_211, %c0_212] : memref<8x32xf32, #tpu.memory_space<vmem>>, vector<8x32xf32>
      tpu.vector_store %arg25[%c0_211, %c0_212], %299 {strides = array<i32>} : memref<8x32xf32, #tpu.memory_space<vmem>>, vector<8x32xf32>,
    } else {
    }
    %c0 = arith.constant 0 : index
    %c0_1 = arith.constant 0 : index
    %c0_2 = arith.constant 0 : index
    %3 = vector.load %arg2[%c0, %c0_1, %c0_2] : memref<1x1x8xi32, #tpu.memory_space<vmem>>, vector<1x1x8xi32>
    %4 = vector.shape_cast %3 : vector<1x1x8xi32> to vector<1x8xi32>
    %c0_i32_3 = arith.constant 0 : i32
    %5 = vector.broadcast %c0_i32_3 : i32 to vector<1x8xi32>
    %6 = arith.cmpi sgt, %4, %5 : vector<1x8xi32>
    %cst = arith.constant 0.000000e+00 : f32
    %cst_4 = arith.constant -1.000000e+09 : f32
    %7 = vector.broadcast %cst : f32 to vector<1x8xf32>
    %8 = vector.broadcast %cst_4 : f32 to vector<1x8xf32>
    %9 = arith.select %6, %7, %8 : vector<1x8xi1>, vector<1x8xf32>
    %c0_5 = arith.constant 0 : index
    %c0_6 = arith.constant 0 : index
    %10 = vector.load %arg25[%c0_5, %c0_6] : memref<8x32xf32, #tpu.memory_space<vmem>>, vector<8x32xf32>
    %11 = arith.truncf %10 : vector<8x32xf32> to vector<8x32xbf16>
    %cst_7 = arith.constant 0.000000e+00 : f32
    %12 = vector.broadcast %cst_7 : f32 to vector<8x32xf32>
    %c0_8 = arith.constant 0 : index
    %c0_9 = arith.constant 0 : index
    %c0_10 = arith.constant 0 : index
    %c0_11 = arith.constant 0 : index
    %13 = vector.load %arg6[%c0_8, %c0_9, %c0_10, %c0_11] : memref<1x4x32x8xbf16, #tpu.memory_space<vmem>>, vector<1x1x32x8xbf16>
    %14 = vector.shape_cast %13 : vector<1x1x32x8xbf16> to vector<32x8xbf16>
    %cst_12 = arith.constant dense<0.000000e+00> : vector<8x8xf32>
    %15 = tpu.matmul %11, %14, %cst_12 {dimension_numbers = #tpu.dot_dimension_numbers<[1], [0], [0], [1], [0, 0, 1, 1], [], []>} : vector<8x32xbf16>, vector<32x8xbf16>, vector<8x8xf32> -> vector<8x8xf32>
    %c0_13 = arith.constant 0 : index
    %c0_14 = arith.constant 0 : index
    %c0_15 = arith.constant 0 : index
    %c0_16 = arith.constant 0 : index
    %16 = vector.load %arg9[%c0_13, %c0_14, %c0_15, %c0_16] : memref<1x4x1x8xf32, #tpu.memory_space<vmem>>, vector<1x1x1x8xf32>
    %17 = vector.shape_cast %16 : vector<1x1x1x8xf32> to vector<1x8xf32>
    %18 = vector.broadcast %17 : vector<1x8xf32> to vector<8x8xf32>
    %19 = arith.addf %15, %18 : vector<8x8xf32>
    %c0_17 = arith.constant 0 : index
    %c0_18 = arith.constant 0 : index
    %c0_19 = arith.constant 0 : index
    %c0_20 = arith.constant 0 : index
    %20 = vector.load %arg7[%c0_17, %c0_18, %c0_19, %c0_20] : memref<1x4x32x8xbf16, #tpu.memory_space<vmem>>, vector<1x1x32x8xbf16>
    %21 = vector.shape_cast %20 : vector<1x1x32x8xbf16> to vector<32x8xbf16>
    %cst_21 = arith.constant dense<0.000000e+00> : vector<8x8xf32>
    %22 = tpu.matmul %11, %21, %cst_21 {dimension_numbers = #tpu.dot_dimension_numbers<[1], [0], [0], [1], [0, 0, 1, 1], [], []>} : vector<8x32xbf16>, vector<32x8xbf16>, vector<8x8xf32> -> vector<8x8xf32>
    %c0_22 = arith.constant 0 : index
    %c0_23 = arith.constant 0 : index
    %c0_24 = arith.constant 0 : index
    %c0_25 = arith.constant 0 : index
    %23 = vector.load %arg10[%c0_22, %c0_23, %c0_24, %c0_25] : memref<1x4x1x8xf32, #tpu.memory_space<vmem>>, vector<1x1x1x8xf32>
    %24 = vector.shape_cast %23 : vector<1x1x1x8xf32> to vector<1x8xf32>
    %25 = vector.broadcast %24 : vector<1x8xf32> to vector<8x8xf32>
    %26 = arith.addf %22, %25 : vector<8x8xf32>
    %c0_26 = arith.constant 0 : index
    %c0_27 = arith.constant 0 : index
    %c0_28 = arith.constant 0 : index
    %c0_29 = arith.constant 0 : index
    %27 = vector.load %arg8[%c0_26, %c0_27, %c0_28, %c0_29] : memref<1x4x32x8xbf16, #tpu.memory_space<vmem>>, vector<1x1x32x8xbf16>
    %28 = vector.shape_cast %27 : vector<1x1x32x8xbf16> to vector<32x8xbf16>
    %cst_30 = arith.constant dense<0.000000e+00> : vector<8x8xf32>
    %29 = tpu.matmul %11, %28, %cst_30 {dimension_numbers = #tpu.dot_dimension_numbers<[1], [0], [0], [1], [0, 0, 1, 1], [], []>} : vector<8x32xbf16>, vector<32x8xbf16>, vector<8x8xf32> -> vector<8x8xf32>
    %c0_31 = arith.constant 0 : index
    %c0_32 = arith.constant 0 : index
    %c0_33 = arith.constant 0 : index
    %c0_34 = arith.constant 0 : index
    %30 = vector.load %arg11[%c0_31, %c0_32, %c0_33, %c0_34] : memref<1x4x1x8xf32, #tpu.memory_space<vmem>>, vector<1x1x1x8xf32>
    %31 = vector.shape_cast %30 : vector<1x1x1x8xf32> to vector<1x8xf32>
    %32 = vector.broadcast %31 : vector<1x8xf32> to vector<8x8xf32>
    %33 = arith.addf %29, %32 : vector<8x8xf32>
    %cst_35 = arith.constant dense<0.000000e+00> : vector<8x8xf32>
    %34 = tpu.matmul %19, %26, %cst_35 {dimension_numbers = #tpu.dot_dimension_numbers<[1], [1], [0], [0], [0, 0, 1, 0], [], []>} : vector<8x8xf32>, vector<8x8xf32>, vector<8x8xf32> -> vector<8x8xf32>
    %cst_36 = arith.constant 0.353553385 : f32
    %35 = vector.broadcast %cst_36 : f32 to vector<8x8xf32>
    %36 = arith.mulf %34, %35 : vector<8x8xf32>
    %37 = vector.broadcast %9 : vector<1x8xf32> to vector<8x8xf32>
    %38 = arith.addf %36, %37 : vector<8x8xf32>
    %cst_37 = arith.constant dense<0xFF800000> : vector<8xf32>
    %39 = vector.multi_reduction <maximumf>, %38, %cst_37 [1] : vector<8x8xf32> to vector<8xf32>
    %40 = vector.shape_cast %39 : vector<8xf32> to vector<8x1xf32>
    %41 = vector.broadcast %40 : vector<8x1xf32> to vector<8x8xf32>
    %42 = arith.subf %38, %41 : vector<8x8xf32>
    %43 = math.exp %42 : vector<8x8xf32>
    %cst_38 = arith.constant dense<0.000000e+00> : vector<8xf32>
    %44 = vector.multi_reduction <add>, %43, %cst_38 [1] : vector<8x8xf32> to vector<8xf32>
    %45 = vector.shape_cast %44 : vector<8xf32> to vector<8x1xf32>
    %46 = tpu.reciprocal %45 {approx = true} : vector<8x1xf32> -> vector<8x1xf32>
    %47 = vector.broadcast %46 : vector<8x1xf32> to vector<8x8xf32>
    %48 = arith.mulf %43, %47 : vector<8x8xf32>
    %49 = arith.truncf %48 : vector<8x8xf32> to vector<8x8xbf16>
    %50 = arith.truncf %33 : vector<8x8xf32> to vector<8x8xbf16>
    %cst_39 = arith.constant dense<0.000000e+00> : vector<8x8xf32>
    %51 = tpu.matmul %49, %50, %cst_39 {dimension_numbers = #tpu.dot_dimension_numbers<[1], [0], [0], [1], [0, 0, 1, 1], [], []>} : vector<8x8xbf16>, vector<8x8xbf16>, vector<8x8xf32> -> vector<8x8xf32>
    %52 = arith.truncf %51 : vector<8x8xf32> to vector<8x8xbf16>
    %c0_40 = arith.constant 0 : index
    %c0_41 = arith.constant 0 : index
    %c0_42 = arith.constant 0 : index
    %c0_43 = arith.constant 0 : index
    %53 = vector.load %arg12[%c0_40, %c0_41, %c0_42, %c0_43] : memref<1x4x8x32xbf16, #tpu.memory_space<vmem>>, vector<1x1x8x32xbf16>
    %54 = vector.shape_cast %53 : vector<1x1x8x32xbf16> to vector<8x32xbf16>
    %cst_44 = arith.constant dense<0.000000e+00> : vector<8x32xf32>
    %55 = tpu.matmul %52, %54, %cst_44 {dimension_numbers = #tpu.dot_dimension_numbers<[1], [0], [0], [1], [0, 0, 1, 1], [], []>} : vector<8x8xbf16>, vector<8x32xbf16>, vector<8x32xf32> -> vector<8x32xf32>
    %56 = arith.addf %12, %55 : vector<8x32xf32>
    %c0_45 = arith.constant 0 : index
    %c1 = arith.constant 1 : index
    %c0_46 = arith.constant 0 : index
    %c0_47 = arith.constant 0 : index
    %57 = vector.load %arg6[%c0_45, %c1, %c0_46, %c0_47] : memref<1x4x32x8xbf16, #tpu.memory_space<vmem>>, vector<1x1x32x8xbf16>
    %58 = vector.shape_cast %57 : vector<1x1x32x8xbf16> to vector<32x8xbf16>
    %cst_48 = arith.constant dense<0.000000e+00> : vector<8x8xf32>
    %59 = tpu.matmul %11, %58, %cst_48 {dimension_numbers = #tpu.dot_dimension_numbers<[1], [0], [0], [1], [0, 0, 1, 1], [], []>} : vector<8x32xbf16>, vector<32x8xbf16>, vector<8x8xf32> -> vector<8x8xf32>
    %c0_49 = arith.constant 0 : index
    %c1_50 = arith.constant 1 : index
    %c0_51 = arith.constant 0 : index
    %c0_52 = arith.constant 0 : index
    %60 = vector.load %arg9[%c0_49, %c1_50, %c0_51, %c0_52] : memref<1x4x1x8xf32, #tpu.memory_space<vmem>>, vector<1x1x1x8xf32>
    %61 = vector.shape_cast %60 : vector<1x1x1x8xf32> to vector<1x8xf32>
    %62 = vector.broadcast %61 : vector<1x8xf32> to vector<8x8xf32>
    %63 = arith.addf %59, %62 : vector<8x8xf32>
    %c0_53 = arith.constant 0 : index
    %c1_54 = arith.constant 1 : index
    %c0_55 = arith.constant 0 : index
    %c0_56 = arith.constant 0 : index
    %64 = vector.load %arg7[%c0_53, %c1_54, %c0_55, %c0_56] : memref<1x4x32x8xbf16, #tpu.memory_space<vmem>>, vector<1x1x32x8xbf16>
    %65 = vector.shape_cast %64 : vector<1x1x32x8xbf16> to vector<32x8xbf16>
    %cst_57 = arith.constant dense<0.000000e+00> : vector<8x8xf32>
    %66 = tpu.matmul %11, %65, %cst_57 {dimension_numbers = #tpu.dot_dimension_numbers<[1], [0], [0], [1], [0, 0, 1, 1], [], []>} : vector<8x32xbf16>, vector<32x8xbf16>, vector<8x8xf32> -> vector<8x8xf32>
    %c0_58 = arith.constant 0 : index
    %c1_59 = arith.constant 1 : index
    %c0_60 = arith.constant 0 : index
    %c0_61 = arith.constant 0 : index
    %67 = vector.load %arg10[%c0_58, %c1_59, %c0_60, %c0_61] : memref<1x4x1x8xf32, #tpu.memory_space<vmem>>, vector<1x1x1x8xf32>
    %68 = vector.shape_cast %67 : vector<1x1x1x8xf32> to vector<1x8xf32>
    %69 = vector.broadcast %68 : vector<1x8xf32> to vector<8x8xf32>
    %70 = arith.addf %66, %69 : vector<8x8xf32>
    %c0_62 = arith.constant 0 : index
    %c1_63 = arith.constant 1 : index
    %c0_64 = arith.constant 0 : index
    %c0_65 = arith.constant 0 : index
    %71 = vector.load %arg8[%c0_62, %c1_63, %c0_64, %c0_65] : memref<1x4x32x8xbf16, #tpu.memory_space<vmem>>, vector<1x1x32x8xbf16>
    %72 = vector.shape_cast %71 : vector<1x1x32x8xbf16> to vector<32x8xbf16>
    %cst_66 = arith.constant dense<0.000000e+00> : vector<8x8xf32>
    %73 = tpu.matmul %11, %72, %cst_66 {dimension_numbers = #tpu.dot_dimension_numbers<[1], [0], [0], [1], [0, 0, 1, 1], [], []>} : vector<8x32xbf16>, vector<32x8xbf16>, vector<8x8xf32> -> vector<8x8xf32>
    %c0_67 = arith.constant 0 : index
    %c1_68 = arith.constant 1 : index
    %c0_69 = arith.constant 0 : index
    %c0_70 = arith.constant 0 : index
    %74 = vector.load %arg11[%c0_67, %c1_68, %c0_69, %c0_70] : memref<1x4x1x8xf32, #tpu.memory_space<vmem>>, vector<1x1x1x8xf32>
    %75 = vector.shape_cast %74 : vector<1x1x1x8xf32> to vector<1x8xf32>
    %76 = vector.broadcast %75 : vector<1x8xf32> to vector<8x8xf32>
    %77 = arith.addf %73, %76 : vector<8x8xf32>
    %cst_71 = arith.constant dense<0.000000e+00> : vector<8x8xf32>
    %78 = tpu.matmul %63, %70, %cst_71 {dimension_numbers = #tpu.dot_dimension_numbers<[1], [1], [0], [0], [0, 0, 1, 0], [], []>} : vector<8x8xf32>, vector<8x8xf32>, vector<8x8xf32> -> vector<8x8xf32>
    %cst_72 = arith.constant 0.353553385 : f32
    %79 = vector.broadcast %cst_72 : f32 to vector<8x8xf32>
    %80 = arith.mulf %78, %79 : vector<8x8xf32>
    %81 = vector.broadcast %9 : vector<1x8xf32> to vector<8x8xf32>
    %82 = arith.addf %80, %81 : vector<8x8xf32>
    %cst_73 = arith.constant dense<0xFF800000> : vector<8xf32>
    %83 = vector.multi_reduction <maximumf>, %82, %cst_73 [1] : vector<8x8xf32> to vector<8xf32>
    %84 = vector.shape_cast %83 : vector<8xf32> to vector<8x1xf32>
    %85 = vector.broadcast %84 : vector<8x1xf32> to vector<8x8xf32>
    %86 = arith.subf %82, %85 : vector<8x8xf32>
    %87 = math.exp %86 : vector<8x8xf32>
    %cst_74 = arith.constant dense<0.000000e+00> : vector<8xf32>
    %88 = vector.multi_reduction <add>, %87, %cst_74 [1] : vector<8x8xf32> to vector<8xf32>
    %89 = vector.shape_cast %88 : vector<8xf32> to vector<8x1xf32>
    %90 = tpu.reciprocal %89 {approx = true} : vector<8x1xf32> -> vector<8x1xf32>
    %91 = vector.broadcast %90 : vector<8x1xf32> to vector<8x8xf32>
    %92 = arith.mulf %87, %91 : vector<8x8xf32>
    %93 = arith.truncf %92 : vector<8x8xf32> to vector<8x8xbf16>
    %94 = arith.truncf %77 : vector<8x8xf32> to vector<8x8xbf16>
    %cst_75 = arith.constant dense<0.000000e+00> : vector<8x8xf32>
    %95 = tpu.matmul %93, %94, %cst_75 {dimension_numbers = #tpu.dot_dimension_numbers<[1], [0], [0], [1], [0, 0, 1, 1], [], []>} : vector<8x8xbf16>, vector<8x8xbf16>, vector<8x8xf32> -> vector<8x8xf32>
    %96 = arith.truncf %95 : vector<8x8xf32> to vector<8x8xbf16>
    %c0_76 = arith.constant 0 : index
    %c1_77 = arith.constant 1 : index
    %c0_78 = arith.constant 0 : index
    %c0_79 = arith.constant 0 : index
    %97 = vector.load %arg12[%c0_76, %c1_77, %c0_78, %c0_79] : memref<1x4x8x32xbf16, #tpu.memory_space<vmem>>, vector<1x1x8x32xbf16>
    %98 = vector.shape_cast %97 : vector<1x1x8x32xbf16> to vector<8x32xbf16>
    %cst_80 = arith.constant dense<0.000000e+00> : vector<8x32xf32>
    %99 = tpu.matmul %96, %98, %cst_80 {dimension_numbers = #tpu.dot_dimension_numbers<[1], [0], [0], [1], [0, 0, 1, 1], [], []>} : vector<8x8xbf16>, vector<8x32xbf16>, vector<8x32xf32> -> vector<8x32xf32>
    %100 = arith.addf %56, %99 : vector<8x32xf32>
    %c0_81 = arith.constant 0 : index
    %c2 = arith.constant 2 : index
    %c0_82 = arith.constant 0 : index
    %c0_83 = arith.constant 0 : index
    %101 = vector.load %arg6[%c0_81, %c2, %c0_82, %c0_83] : memref<1x4x32x8xbf16, #tpu.memory_space<vmem>>, vector<1x1x32x8xbf16>
    %102 = vector.shape_cast %101 : vector<1x1x32x8xbf16> to vector<32x8xbf16>
    %cst_84 = arith.constant dense<0.000000e+00> : vector<8x8xf32>
    %103 = tpu.matmul %11, %102, %cst_84 {dimension_numbers = #tpu.dot_dimension_numbers<[1], [0], [0], [1], [0, 0, 1, 1], [], []>} : vector<8x32xbf16>, vector<32x8xbf16>, vector<8x8xf32> -> vector<8x8xf32>
    %c0_85 = arith.constant 0 : index
    %c2_86 = arith.constant 2 : index
    %c0_87 = arith.constant 0 : index
    %c0_88 = arith.constant 0 : index
    %104 = vector.load %arg9[%c0_85, %c2_86, %c0_87, %c0_88] : memref<1x4x1x8xf32, #tpu.memory_space<vmem>>, vector<1x1x1x8xf32>
    %105 = vector.shape_cast %104 : vector<1x1x1x8xf32> to vector<1x8xf32>
    %106 = vector.broadcast %105 : vector<1x8xf32> to vector<8x8xf32>
    %107 = arith.addf %103, %106 : vector<8x8xf32>
    %c0_89 = arith.constant 0 : index
    %c2_90 = arith.constant 2 : index
    %c0_91 = arith.constant 0 : index
    %c0_92 = arith.constant 0 : index
    %108 = vector.load %arg7[%c0_89, %c2_90, %c0_91, %c0_92] : memref<1x4x32x8xbf16, #tpu.memory_space<vmem>>, vector<1x1x32x8xbf16>
    %109 = vector.shape_cast %108 : vector<1x1x32x8xbf16> to vector<32x8xbf16>
    %cst_93 = arith.constant dense<0.000000e+00> : vector<8x8xf32>
    %110 = tpu.matmul %11, %109, %cst_93 {dimension_numbers = #tpu.dot_dimension_numbers<[1], [0], [0], [1], [0, 0, 1, 1], [], []>} : vector<8x32xbf16>, vector<32x8xbf16>, vector<8x8xf32> -> vector<8x8xf32>
    %c0_94 = arith.constant 0 : index
    %c2_95 = arith.constant 2 : index
    %c0_96 = arith.constant 0 : index
    %c0_97 = arith.constant 0 : index
    %111 = vector.load %arg10[%c0_94, %c2_95, %c0_96, %c0_97] : memref<1x4x1x8xf32, #tpu.memory_space<vmem>>, vector<1x1x1x8xf32>
    %112 = vector.shape_cast %111 : vector<1x1x1x8xf32> to vector<1x8xf32>
    %113 = vector.broadcast %112 : vector<1x8xf32> to vector<8x8xf32>
    %114 = arith.addf %110, %113 : vector<8x8xf32>
    %c0_98 = arith.constant 0 : index
    %c2_99 = arith.constant 2 : index
    %c0_100 = arith.constant 0 : index
    %c0_101 = arith.constant 0 : index
    %115 = vector.load %arg8[%c0_98, %c2_99, %c0_100, %c0_101] : memref<1x4x32x8xbf16, #tpu.memory_space<vmem>>, vector<1x1x32x8xbf16>
    %116 = vector.shape_cast %115 : vector<1x1x32x8xbf16> to vector<32x8xbf16>
    %cst_102 = arith.constant dense<0.000000e+00> : vector<8x8xf32>
    %117 = tpu.matmul %11, %116, %cst_102 {dimension_numbers = #tpu.dot_dimension_numbers<[1], [0], [0], [1], [0, 0, 1, 1], [], []>} : vector<8x32xbf16>, vector<32x8xbf16>, vector<8x8xf32> -> vector<8x8xf32>
    %c0_103 = arith.constant 0 : index
    %c2_104 = arith.constant 2 : index
    %c0_105 = arith.constant 0 : index
    %c0_106 = arith.constant 0 : index
    %118 = vector.load %arg11[%c0_103, %c2_104, %c0_105, %c0_106] : memref<1x4x1x8xf32, #tpu.memory_space<vmem>>, vector<1x1x1x8xf32>
    %119 = vector.shape_cast %118 : vector<1x1x1x8xf32> to vector<1x8xf32>
    %120 = vector.broadcast %119 : vector<1x8xf32> to vector<8x8xf32>
    %121 = arith.addf %117, %120 : vector<8x8xf32>
    %cst_107 = arith.constant dense<0.000000e+00> : vector<8x8xf32>
    %122 = tpu.matmul %107, %114, %cst_107 {dimension_numbers = #tpu.dot_dimension_numbers<[1], [1], [0], [0], [0, 0, 1, 0], [], []>} : vector<8x8xf32>, vector<8x8xf32>, vector<8x8xf32> -> vector<8x8xf32>
    %cst_108 = arith.constant 0.353553385 : f32
    %123 = vector.broadcast %cst_108 : f32 to vector<8x8xf32>
    %124 = arith.mulf %122, %123 : vector<8x8xf32>
    %125 = vector.broadcast %9 : vector<1x8xf32> to vector<8x8xf32>
    %126 = arith.addf %124, %125 : vector<8x8xf32>
    %cst_109 = arith.constant dense<0xFF800000> : vector<8xf32>
    %127 = vector.multi_reduction <maximumf>, %126, %cst_109 [1] : vector<8x8xf32> to vector<8xf32>
    %128 = vector.shape_cast %127 : vector<8xf32> to vector<8x1xf32>
    %129 = vector.broadcast %128 : vector<8x1xf32> to vector<8x8xf32>
    %130 = arith.subf %126, %129 : vector<8x8xf32>
    %131 = math.exp %130 : vector<8x8xf32>
    %cst_110 = arith.constant dense<0.000000e+00> : vector<8xf32>
    %132 = vector.multi_reduction <add>, %131, %cst_110 [1] : vector<8x8xf32> to vector<8xf32>
    %133 = vector.shape_cast %132 : vector<8xf32> to vector<8x1xf32>
    %134 = tpu.reciprocal %133 {approx = true} : vector<8x1xf32> -> vector<8x1xf32>
    %135 = vector.broadcast %134 : vector<8x1xf32> to vector<8x8xf32>
    %136 = arith.mulf %131, %135 : vector<8x8xf32>
    %137 = arith.truncf %136 : vector<8x8xf32> to vector<8x8xbf16>
    %138 = arith.truncf %121 : vector<8x8xf32> to vector<8x8xbf16>
    %cst_111 = arith.constant dense<0.000000e+00> : vector<8x8xf32>
    %139 = tpu.matmul %137, %138, %cst_111 {dimension_numbers = #tpu.dot_dimension_numbers<[1], [0], [0], [1], [0, 0, 1, 1], [], []>} : vector<8x8xbf16>, vector<8x8xbf16>, vector<8x8xf32> -> vector<8x8xf32>
    %140 = arith.truncf %139 : vector<8x8xf32> to vector<8x8xbf16>
    %c0_112 = arith.constant 0 : index
    %c2_113 = arith.constant 2 : index
    %c0_114 = arith.constant 0 : index
    %c0_115 = arith.constant 0 : index
    %141 = vector.load %arg12[%c0_112, %c2_113, %c0_114, %c0_115] : memref<1x4x8x32xbf16, #tpu.memory_space<vmem>>, vector<1x1x8x32xbf16>
    %142 = vector.shape_cast %141 : vector<1x1x8x32xbf16> to vector<8x32xbf16>
    %cst_116 = arith.constant dense<0.000000e+00> : vector<8x32xf32>
    %143 = tpu.matmul %140, %142, %cst_116 {dimension_numbers = #tpu.dot_dimension_numbers<[1], [0], [0], [1], [0, 0, 1, 1], [], []>} : vector<8x8xbf16>, vector<8x32xbf16>, vector<8x32xf32> -> vector<8x32xf32>
    %144 = arith.addf %100, %143 : vector<8x32xf32>
    %c0_117 = arith.constant 0 : index
    %c3 = arith.constant 3 : index
    %c0_118 = arith.constant 0 : index
    %c0_119 = arith.constant 0 : index
    %145 = vector.load %arg6[%c0_117, %c3, %c0_118, %c0_119] : memref<1x4x32x8xbf16, #tpu.memory_space<vmem>>, vector<1x1x32x8xbf16>
    %146 = vector.shape_cast %145 : vector<1x1x32x8xbf16> to vector<32x8xbf16>
    %cst_120 = arith.constant dense<0.000000e+00> : vector<8x8xf32>
    %147 = tpu.matmul %11, %146, %cst_120 {dimension_numbers = #tpu.dot_dimension_numbers<[1], [0], [0], [1], [0, 0, 1, 1], [], []>} : vector<8x32xbf16>, vector<32x8xbf16>, vector<8x8xf32> -> vector<8x8xf32>
    %c0_121 = arith.constant 0 : index
    %c3_122 = arith.constant 3 : index
    %c0_123 = arith.constant 0 : index
    %c0_124 = arith.constant 0 : index
    %148 = vector.load %arg9[%c0_121, %c3_122, %c0_123, %c0_124] : memref<1x4x1x8xf32, #tpu.memory_space<vmem>>, vector<1x1x1x8xf32>
    %149 = vector.shape_cast %148 : vector<1x1x1x8xf32> to vector<1x8xf32>
    %150 = vector.broadcast %149 : vector<1x8xf32> to vector<8x8xf32>
    %151 = arith.addf %147, %150 : vector<8x8xf32>
    %c0_125 = arith.constant 0 : index
    %c3_126 = arith.constant 3 : index
    %c0_127 = arith.constant 0 : index
    %c0_128 = arith.constant 0 : index
    %152 = vector.load %arg7[%c0_125, %c3_126, %c0_127, %c0_128] : memref<1x4x32x8xbf16, #tpu.memory_space<vmem>>, vector<1x1x32x8xbf16>
    %153 = vector.shape_cast %152 : vector<1x1x32x8xbf16> to vector<32x8xbf16>
    %cst_129 = arith.constant dense<0.000000e+00> : vector<8x8xf32>
    %154 = tpu.matmul %11, %153, %cst_129 {dimension_numbers = #tpu.dot_dimension_numbers<[1], [0], [0], [1], [0, 0, 1, 1], [], []>} : vector<8x32xbf16>, vector<32x8xbf16>, vector<8x8xf32> -> vector<8x8xf32>
    %c0_130 = arith.constant 0 : index
    %c3_131 = arith.constant 3 : index
    %c0_132 = arith.constant 0 : index
    %c0_133 = arith.constant 0 : index
    %155 = vector.load %arg10[%c0_130, %c3_131, %c0_132, %c0_133] : memref<1x4x1x8xf32, #tpu.memory_space<vmem>>, vector<1x1x1x8xf32>
    %156 = vector.shape_cast %155 : vector<1x1x1x8xf32> to vector<1x8xf32>
    %157 = vector.broadcast %156 : vector<1x8xf32> to vector<8x8xf32>
    %158 = arith.addf %154, %157 : vector<8x8xf32>
    %c0_134 = arith.constant 0 : index
    %c3_135 = arith.constant 3 : index
    %c0_136 = arith.constant 0 : index
    %c0_137 = arith.constant 0 : index
    %159 = vector.load %arg8[%c0_134, %c3_135, %c0_136, %c0_137] : memref<1x4x32x8xbf16, #tpu.memory_space<vmem>>, vector<1x1x32x8xbf16>
    %160 = vector.shape_cast %159 : vector<1x1x32x8xbf16> to vector<32x8xbf16>
    %cst_138 = arith.constant dense<0.000000e+00> : vector<8x8xf32>
    %161 = tpu.matmul %11, %160, %cst_138 {dimension_numbers = #tpu.dot_dimension_numbers<[1], [0], [0], [1], [0, 0, 1, 1], [], []>} : vector<8x32xbf16>, vector<32x8xbf16>, vector<8x8xf32> -> vector<8x8xf32>
    %c0_139 = arith.constant 0 : index
    %c3_140 = arith.constant 3 : index
    %c0_141 = arith.constant 0 : index
    %c0_142 = arith.constant 0 : index
    %162 = vector.load %arg11[%c0_139, %c3_140, %c0_141, %c0_142] : memref<1x4x1x8xf32, #tpu.memory_space<vmem>>, vector<1x1x1x8xf32>
    %163 = vector.shape_cast %162 : vector<1x1x1x8xf32> to vector<1x8xf32>
    %164 = vector.broadcast %163 : vector<1x8xf32> to vector<8x8xf32>
    %165 = arith.addf %161, %164 : vector<8x8xf32>
    %cst_143 = arith.constant dense<0.000000e+00> : vector<8x8xf32>
    %166 = tpu.matmul %151, %158, %cst_143 {dimension_numbers = #tpu.dot_dimension_numbers<[1], [1], [0], [0], [0, 0, 1, 0], [], []>} : vector<8x8xf32>, vector<8x8xf32>, vector<8x8xf32> -> vector<8x8xf32>
    %cst_144 = arith.constant 0.353553385 : f32
    %167 = vector.broadcast %cst_144 : f32 to vector<8x8xf32>
    %168 = arith.mulf %166, %167 : vector<8x8xf32>
    %169 = vector.broadcast %9 : vector<1x8xf32> to vector<8x8xf32>
    %170 = arith.addf %168, %169 : vector<8x8xf32>
    %cst_145 = arith.constant dense<0xFF800000> : vector<8xf32>
    %171 = vector.multi_reduction <maximumf>, %170, %cst_145 [1] : vector<8x8xf32> to vector<8xf32>
    %172 = vector.shape_cast %171 : vector<8xf32> to vector<8x1xf32>
    %173 = vector.broadcast %172 : vector<8x1xf32> to vector<8x8xf32>
    %174 = arith.subf %170, %173 : vector<8x8xf32>
    %175 = math.exp %174 : vector<8x8xf32>
    %cst_146 = arith.constant dense<0.000000e+00> : vector<8xf32>
    %176 = vector.multi_reduction <add>, %175, %cst_146 [1] : vector<8x8xf32> to vector<8xf32>
    %177 = vector.shape_cast %176 : vector<8xf32> to vector<8x1xf32>
    %178 = tpu.reciprocal %177 {approx = true} : vector<8x1xf32> -> vector<8x1xf32>
    %179 = vector.broadcast %178 : vector<8x1xf32> to vector<8x8xf32>
    %180 = arith.mulf %175, %179 : vector<8x8xf32>
    %181 = arith.truncf %180 : vector<8x8xf32> to vector<8x8xbf16>
    %182 = arith.truncf %165 : vector<8x8xf32> to vector<8x8xbf16>
    %cst_147 = arith.constant dense<0.000000e+00> : vector<8x8xf32>
    %183 = tpu.matmul %181, %182, %cst_147 {dimension_numbers = #tpu.dot_dimension_numbers<[1], [0], [0], [1], [0, 0, 1, 1], [], []>} : vector<8x8xbf16>, vector<8x8xbf16>, vector<8x8xf32> -> vector<8x8xf32>
    %184 = arith.truncf %183 : vector<8x8xf32> to vector<8x8xbf16>
    %c0_148 = arith.constant 0 : index
    %c3_149 = arith.constant 3 : index
    %c0_150 = arith.constant 0 : index
    %c0_151 = arith.constant 0 : index
    %185 = vector.load %arg12[%c0_148, %c3_149, %c0_150, %c0_151] : memref<1x4x8x32xbf16, #tpu.memory_space<vmem>>, vector<1x1x8x32xbf16>
    %186 = vector.shape_cast %185 : vector<1x1x8x32xbf16> to vector<8x32xbf16>
    %cst_152 = arith.constant dense<0.000000e+00> : vector<8x32xf32>
    %187 = tpu.matmul %184, %186, %cst_152 {dimension_numbers = #tpu.dot_dimension_numbers<[1], [0], [0], [1], [0, 0, 1, 1], [], []>} : vector<8x8xbf16>, vector<8x32xbf16>, vector<8x32xf32> -> vector<8x32xf32>
    %188 = arith.addf %144, %187 : vector<8x32xf32>
    %c0_153 = arith.constant 0 : index
    %c0_154 = arith.constant 0 : index
    %c0_155 = arith.constant 0 : index
    %189 = vector.load %arg13[%c0_153, %c0_154, %c0_155] : memref<1x1x32xf32, #tpu.memory_space<vmem>>, vector<1x1x32xf32>
    %190 = vector.shape_cast %189 : vector<1x1x32xf32> to vector<1x32xf32>
    %191 = vector.broadcast %190 : vector<1x32xf32> to vector<8x32xf32>
    %192 = arith.addf %188, %191 : vector<8x32xf32>
    %193 = arith.addf %192, %10 : vector<8x32xf32>
    %c0_156 = arith.constant 0 : index
    %c0_157 = arith.constant 0 : index
    %c0_158 = arith.constant 0 : index
    %194 = vector.load %arg14[%c0_156, %c0_157, %c0_158] : memref<1x1x32xf32, #tpu.memory_space<vmem>>, vector<1x1x32xf32>
    %195 = vector.shape_cast %194 : vector<1x1x32xf32> to vector<1x32xf32>
    %c0_159 = arith.constant 0 : index
    %c0_160 = arith.constant 0 : index
    %c0_161 = arith.constant 0 : index
    %196 = vector.load %arg15[%c0_159, %c0_160, %c0_161] : memref<1x1x32xf32, #tpu.memory_space<vmem>>, vector<1x1x32xf32>
    %197 = vector.shape_cast %196 : vector<1x1x32xf32> to vector<1x32xf32>
    %cst_162 = arith.constant dense<0.000000e+00> : vector<8xf32>
    %198 = vector.multi_reduction <add>, %193, %cst_162 [1] : vector<8x32xf32> to vector<8xf32>
    %199 = vector.shape_cast %198 : vector<8xf32> to vector<8x1xf32>
    %cst_163 = arith.constant 3.200000e+01 : f32
    %200 = vector.broadcast %cst_163 : f32 to vector<8x1xf32>
    %201 = arith.divf %199, %200 : vector<8x1xf32>
    %202 = vector.broadcast %201 : vector<8x1xf32> to vector<8x32xf32>
    %203 = arith.subf %193, %202 : vector<8x32xf32>
    %204 = arith.mulf %203, %203 : vector<8x32xf32>
    %cst_164 = arith.constant dense<0.000000e+00> : vector<8xf32>
    %205 = vector.multi_reduction <add>, %204, %cst_164 [1] : vector<8x32xf32> to vector<8xf32>
    %206 = vector.shape_cast %205 : vector<8xf32> to vector<8x1xf32>
    %cst_165 = arith.constant 3.200000e+01 : f32
    %207 = vector.broadcast %cst_165 : f32 to vector<8x1xf32>
    %208 = arith.divf %206, %207 : vector<8x1xf32>
    %cst_166 = arith.constant 1.000000e-07 : f32
    %209 = vector.broadcast %cst_166 : f32 to vector<8x1xf32>
    %210 = arith.addf %208, %209 : vector<8x1xf32>
    %211 = math.rsqrt %210 : vector<8x1xf32>
    %212 = vector.broadcast %211 : vector<8x1xf32> to vector<8x32xf32>
    %213 = arith.mulf %203, %212 : vector<8x32xf32>
    %214 = vector.broadcast %195 : vector<1x32xf32> to vector<8x32xf32>
    %215 = arith.mulf %213, %214 : vector<8x32xf32>
    %216 = vector.broadcast %197 : vector<1x32xf32> to vector<8x32xf32>
    %217 = arith.addf %215, %216 : vector<8x32xf32>
    %218 = arith.truncf %217 : vector<8x32xf32> to vector<8x32xbf16>
    %c0_167 = arith.constant 0 : index
    %c0_168 = arith.constant 0 : index
    %c0_169 = arith.constant 0 : index
    %219 = vector.load %arg16[%c0_167, %c0_168, %c0_169] : memref<1x32x64xbf16, #tpu.memory_space<vmem>>, vector<1x32x64xbf16>
    %220 = vector.shape_cast %219 : vector<1x32x64xbf16> to vector<32x64xbf16>
    %cst_170 = arith.constant dense<0.000000e+00> : vector<8x64xf32>
    %221 = tpu.matmul %218, %220, %cst_170 {dimension_numbers = #tpu.dot_dimension_numbers<[1], [0], [0], [1], [0, 0, 1, 1], [], []>} : vector<8x32xbf16>, vector<32x64xbf16>, vector<8x64xf32> -> vector<8x64xf32>
    %c0_171 = arith.constant 0 : index
    %c0_172 = arith.constant 0 : index
    %c0_173 = arith.constant 0 : index
    %222 = vector.load %arg17[%c0_171, %c0_172, %c0_173] : memref<1x1x64xf32, #tpu.memory_space<vmem>>, vector<1x1x64xf32>
    %223 = vector.shape_cast %222 : vector<1x1x64xf32> to vector<1x64xf32>
    %224 = vector.broadcast %223 : vector<1x64xf32> to vector<8x64xf32>
    %225 = arith.addf %221, %224 : vector<8x64xf32>
    %226 = arith.mulf %225, %225 : vector<8x64xf32>
    %227 = arith.mulf %225, %226 : vector<8x64xf32>
    %cst_174 = arith.constant 4.471500e-02 : f32
    %228 = vector.broadcast %cst_174 : f32 to vector<8x64xf32>
    %229 = arith.mulf %228, %227 : vector<8x64xf32>
    %230 = arith.addf %225, %229 : vector<8x64xf32>
    %cst_175 = arith.constant 0.797884583 : f32
    %231 = vector.broadcast %cst_175 : f32 to vector<8x64xf32>
    %232 = arith.mulf %231, %230 : vector<8x64xf32>
    %233 = math.tanh %232 : vector<8x64xf32>
    %cst_176 = arith.constant 1.000000e+00 : f32
    %234 = vector.broadcast %cst_176 : f32 to vector<8x64xf32>
    %235 = arith.addf %234, %233 : vector<8x64xf32>
    %cst_177 = arith.constant 5.000000e-01 : f32
    %236 = vector.broadcast %cst_177 : f32 to vector<8x64xf32>
    %237 = arith.mulf %236, %235 : vector<8x64xf32>
    %238 = arith.mulf %225, %237 : vector<8x64xf32>
    %239 = arith.truncf %238 : vector<8x64xf32> to vector<8x64xbf16>
    %c0_178 = arith.constant 0 : index
    %c0_179 = arith.constant 0 : index
    %c0_180 = arith.constant 0 : index
    %240 = vector.load %arg18[%c0_178, %c0_179, %c0_180] : memref<1x64x32xbf16, #tpu.memory_space<vmem>>, vector<1x64x32xbf16>
    %241 = vector.shape_cast %240 : vector<1x64x32xbf16> to vector<64x32xbf16>
    %cst_181 = arith.constant dense<0.000000e+00> : vector<8x32xf32>
    %242 = tpu.matmul %239, %241, %cst_181 {dimension_numbers = #tpu.dot_dimension_numbers<[1], [0], [0], [1], [0, 0, 1, 1], [], []>} : vector<8x64xbf16>, vector<64x32xbf16>, vector<8x32xf32> -> vector<8x32xf32>
    %c0_182 = arith.constant 0 : index
    %c0_183 = arith.constant 0 : index
    %c0_184 = arith.constant 0 : index
    %243 = vector.load %arg19[%c0_182, %c0_183, %c0_184] : memref<1x1x32xf32, #tpu.memory_space<vmem>>, vector<1x1x32xf32>
    %244 = vector.shape_cast %243 : vector<1x1x32xf32> to vector<1x32xf32>
    %245 = vector.broadcast %244 : vector<1x32xf32> to vector<8x32xf32>
    %246 = arith.addf %242, %245 : vector<8x32xf32>
    %247 = arith.addf %246, %217 : vector<8x32xf32>
    %c0_185 = arith.constant 0 : index
    %c0_186 = arith.constant 0 : index
    %c0_187 = arith.constant 0 : index
    %248 = vector.load %arg20[%c0_185, %c0_186, %c0_187] : memref<1x1x32xf32, #tpu.memory_space<vmem>>, vector<1x1x32xf32>
    %249 = vector.shape_cast %248 : vector<1x1x32xf32> to vector<1x32xf32>
    %c0_188 = arith.constant 0 : index
    %c0_189 = arith.constant 0 : index
    %c0_190 = arith.constant 0 : index
    %250 = vector.load %arg21[%c0_188, %c0_189, %c0_190] : memref<1x1x32xf32, #tpu.memory_space<vmem>>, vector<1x1x32xf32>
    %251 = vector.shape_cast %250 : vector<1x1x32xf32> to vector<1x32xf32>
    %cst_191 = arith.constant dense<0.000000e+00> : vector<8xf32>
    %252 = vector.multi_reduction <add>, %247, %cst_191 [1] : vector<8x32xf32> to vector<8xf32>
    %253 = vector.shape_cast %252 : vector<8xf32> to vector<8x1xf32>
    %cst_192 = arith.constant 3.200000e+01 : f32
    %254 = vector.broadcast %cst_192 : f32 to vector<8x1xf32>
    %255 = arith.divf %253, %254 : vector<8x1xf32>
    %256 = vector.broadcast %255 : vector<8x1xf32> to vector<8x32xf32>
    %257 = arith.subf %247, %256 : vector<8x32xf32>
    %258 = arith.mulf %257, %257 : vector<8x32xf32>
    %cst_193 = arith.constant dense<0.000000e+00> : vector<8xf32>
    %259 = vector.multi_reduction <add>, %258, %cst_193 [1] : vector<8x32xf32> to vector<8xf32>
    %260 = vector.shape_cast %259 : vector<8xf32> to vector<8x1xf32>
    %cst_194 = arith.constant 3.200000e+01 : f32
    %261 = vector.broadcast %cst_194 : f32 to vector<8x1xf32>
    %262 = arith.divf %260, %261 : vector<8x1xf32>
    %cst_195 = arith.constant 1.000000e-07 : f32
    %263 = vector.broadcast %cst_195 : f32 to vector<8x1xf32>
    %264 = arith.addf %262, %263 : vector<8x1xf32>
    %265 = math.rsqrt %264 : vector<8x1xf32>
    %266 = vector.broadcast %265 : vector<8x1xf32> to vector<8x32xf32>
    %267 = arith.mulf %257, %266 : vector<8x32xf32>
    %268 = vector.broadcast %249 : vector<1x32xf32> to vector<8x32xf32>
    %269 = arith.mulf %267, %268 : vector<8x32xf32>
    %270 = vector.broadcast %251 : vector<1x32xf32> to vector<8x32xf32>
    %271 = arith.addf %269, %270 : vector<8x32xf32>
    %c0_196 = arith.constant 0 : index
    %c0_197 = arith.constant 0 : index
    %272 = vector.load %arg25[%c0_196, %c0_197] : memref<8x32xf32, #tpu.memory_space<vmem>>, vector<8x32xf32>
    tpu.vector_store %arg25[%c0_196, %c0_197], %271 {strides = array<i32>} : memref<8x32xf32, #tpu.memory_space<vmem>>, vector<8x32xf32>,
    %c1_i32 = arith.constant 1 : i32
    %273 = arith.cmpi eq, %arg1, %c1_i32 : i32
    %274 = arith.extui %273 : i1 to i32
    %c0_i32_198 = arith.constant 0 : i32
    %275 = arith.cmpi ne, %274, %c0_i32_198 : i32
    scf.if %275 {
      %c0_199 = arith.constant 0 : index
      %c0_200 = arith.constant 0 : index
      %276 = vector.load %arg22[%c0_199, %c0_200] : memref<1x32xf32, #tpu.memory_space<vmem>>, vector<1x32xf32>
      %cst_201 = arith.constant dense<0.000000e+00> : vector<1x8xf32>
      %277 = tpu.matmul %276, %271, %cst_201 {dimension_numbers = #tpu.dot_dimension_numbers<[1], [1], [0], [0], [0, 0, 1, 0], [], []>} : vector<1x32xf32>, vector<8x32xf32>, vector<1x8xf32> -> vector<1x8xf32>
      %c0_202 = arith.constant 0 : index
      %c0_203 = arith.constant 0 : index
      %278 = vector.load %arg23[%c0_202, %c0_203] : memref<1x1xf32, #tpu.memory_space<vmem>>, vector<1x1xf32>
      %279 = vector.broadcast %278 : vector<1x1xf32> to vector<1x8xf32>
      %280 = arith.addf %277, %279 : vector<1x8xf32>
      %c0_204 = arith.constant 0 : index
      %c0_205 = arith.constant 0 : index
      %c0_206 = arith.constant 0 : index
      %281 = vector.load %arg24[%c0_204, %c0_205, %c0_206] : memref<1x1x8xf32, #tpu.memory_space<vmem>>, vector<1x1x8xf32>
      %282 = vector.shape_cast %281 : vector<1x1x8xf32> to vector<1x8xf32>
      %283 = vector.shape_cast %280 : vector<1x8xf32> to vector<1x1x8xf32>
      tpu.vector_store %arg24[%c0_204, %c0_205, %c0_206], %283 {strides = array<i32>} : memref<1x1x8xf32, #tpu.memory_space<vmem>>, vector<1x1x8xf32>,
    } else {
    }
    return
  }
  func.func @transform_0(%arg0: i32, %arg1: i32) -> (i32, i32, i32) {
    %c0_i32 = arith.constant 0 : i32
    %c0_i32_0 = arith.constant 0 : i32
    %c0_i32_1 = arith.constant 0 : i32
    return %arg0, %c0_i32, %c0_i32_0 : i32, i32, i32
  }
  func.func @transform_1(%arg0: i32, %arg1: i32) -> (i32, i32, i32) {
    %c0_i32 = arith.constant 0 : i32
    %c0_i32_0 = arith.constant 0 : i32
    %c0_i32_1 = arith.constant 0 : i32
    return %arg0, %c0_i32, %c0_i32_0 : i32, i32, i32
  }
  func.func @transform_2(%arg0: i32, %arg1: i32) -> (i32, i32) {
    %c0_i32 = arith.constant 0 : i32
    %c0_i32_0 = arith.constant 0 : i32
    %c0_i32_1 = arith.constant 0 : i32
    return %c0_i32, %c0_i32_0 : i32, i32
  }
  func.func @transform_3(%arg0: i32, %arg1: i32) -> (i32, i32) {
    %c0_i32 = arith.constant 0 : i32
    %c0_i32_0 = arith.constant 0 : i32
    %c0_i32_1 = arith.constant 0 : i32
    return %c0_i32, %c0_i32_0 : i32, i32
  }
  func.func @transform_4(%arg0: i32, %arg1: i32) -> (i32, i32, i32, i32) {
    %c0_i32 = arith.constant 0 : i32
    %c0_i32_0 = arith.constant 0 : i32
    %c0_i32_1 = arith.constant 0 : i32
    %c0_i32_2 = arith.constant 0 : i32
    return %arg1, %c0_i32, %c0_i32_0, %c0_i32_1 : i32, i32, i32, i32
  }
  func.func @transform_5(%arg0: i32, %arg1: i32) -> (i32, i32, i32, i32) {
    %c0_i32 = arith.constant 0 : i32
    %c0_i32_0 = arith.constant 0 : i32
    %c0_i32_1 = arith.constant 0 : i32
    %c0_i32_2 = arith.constant 0 : i32
    return %arg1, %c0_i32, %c0_i32_0, %c0_i32_1 : i32, i32, i32, i32
  }
  func.func @transform_6(%arg0: i32, %arg1: i32) -> (i32, i32, i32, i32) {
    %c0_i32 = arith.constant 0 : i32
    %c0_i32_0 = arith.constant 0 : i32
    %c0_i32_1 = arith.constant 0 : i32
    %c0_i32_2 = arith.constant 0 : i32
    return %arg1, %c0_i32, %c0_i32_0, %c0_i32_1 : i32, i32, i32, i32
  }
  func.func @transform_7(%arg0: i32, %arg1: i32) -> (i32, i32, i32, i32) {
    %c0_i32 = arith.constant 0 : i32
    %c0_i32_0 = arith.constant 0 : i32
    %c0_i32_1 = arith.constant 0 : i32
    %c0_i32_2 = arith.constant 0 : i32
    return %arg1, %c0_i32, %c0_i32_0, %c0_i32_1 : i32, i32, i32, i32
  }
  func.func @transform_8(%arg0: i32, %arg1: i32) -> (i32, i32, i32, i32) {
    %c0_i32 = arith.constant 0 : i32
    %c0_i32_0 = arith.constant 0 : i32
    %c0_i32_1 = arith.constant 0 : i32
    %c0_i32_2 = arith.constant 0 : i32
    return %arg1, %c0_i32, %c0_i32_0, %c0_i32_1 : i32, i32, i32, i32
  }
  func.func @transform_9(%arg0: i32, %arg1: i32) -> (i32, i32, i32, i32) {
    %c0_i32 = arith.constant 0 : i32
    %c0_i32_0 = arith.constant 0 : i32
    %c0_i32_1 = arith.constant 0 : i32
    %c0_i32_2 = arith.constant 0 : i32
    return %arg1, %c0_i32, %c0_i32_0, %c0_i32_1 : i32, i32, i32, i32
  }
  func.func @transform_10(%arg0: i32, %arg1: i32) -> (i32, i32, i32, i32) {
    %c0_i32 = arith.constant 0 : i32
    %c0_i32_0 = arith.constant 0 : i32
    %c0_i32_1 = arith.constant 0 : i32
    %c0_i32_2 = arith.constant 0 : i32
    return %arg1, %c0_i32, %c0_i32_0, %c0_i32_1 : i32, i32, i32, i32
  }
  func.func @transform_11(%arg0: i32, %arg1: i32) -> (i32, i32, i32) {
    %c0_i32 = arith.constant 0 : i32
    %c0_i32_0 = arith.constant 0 : i32
    %c0_i32_1 = arith.constant 0 : i32
    return %arg1, %c0_i32, %c0_i32_0 : i32, i32, i32
  }
  func.func @transform_12(%arg0: i32, %arg1: i32) -> (i32, i32, i32) {
    %c0_i32 = arith.constant 0 : i32
    %c0_i32_0 = arith.constant 0 : i32
    %c0_i32_1 = arith.constant 0 : i32
    return %arg1, %c0_i32, %c0_i32_0 : i32, i32, i32
  }
  func.func @transform_13(%arg0: i32, %arg1: i32) -> (i32, i32, i32) {
    %c0_i32 = arith.constant 0 : i32
    %c0_i32_0 = arith.constant 0 : i32
    %c0_i32_1 = arith.constant 0 : i32
    return %arg1, %c0_i32, %c0_i32_0 : i32, i32, i32
  }
  func.func @transform_14(%arg0: i32, %arg1: i32) -> (i32, i32, i32) {
    %c0_i32 = arith.constant 0 : i32
    %c0_i32_0 = arith.constant 0 : i32
    %c0_i32_1 = arith.constant 0 : i32
    return %arg1, %c0_i32, %c0_i32_0 : i32, i32, i32
  }
  func.func @transform_15(%arg0: i32, %arg1: i32) -> (i32, i32, i32) {
    %c0_i32 = arith.constant 0 : i32
    %c0_i32_0 = arith.constant 0 : i32
    %c0_i32_1 = arith.constant 0 : i32
    return %arg1, %c0_i32, %c0_i32_0 : i32, i32, i32
  }
  func.func @transform_16(%arg0: i32, %arg1: i32) -> (i32, i32, i32) {
    %c0_i32 = arith.constant 0 : i32
    %c0_i32_0 = arith.constant 0 : i32
    %c0_i32_1 = arith.constant 0 : i32
    return %arg1, %c0_i32, %c0_i32_0 : i32, i32, i32
  }
  func.func @transform_17(%arg0: i32, %arg1: i32) -> (i32, i32, i32) {
    %c0_i32 = arith.constant 0 : i32
    %c0_i32_0 = arith.constant 0 : i32
    %c0_i32_1 = arith.constant 0 : i32
    return %arg1, %c0_i32, %c0_i32_0 : i32, i32, i32
  }
  func.func @transform_18(%arg0: i32, %arg1: i32) -> (i32, i32, i32) {
    %c0_i32 = arith.constant 0 : i32
    %c0_i32_0 = arith.constant 0 : i32
    %c0_i32_1 = arith.constant 0 : i32
    return %arg1, %c0_i32, %c0_i32_0 : i32, i32, i32
  }
  func.func @transform_19(%arg0: i32, %arg1: i32) -> (i32, i32, i32) {
    %c0_i32 = arith.constant 0 : i32
    %c0_i32_0 = arith.constant 0 : i32
    %c0_i32_1 = arith.constant 0 : i32
    return %arg1, %c0_i32, %c0_i32_0 : i32, i32, i32
  }
  func.func @transform_20(%arg0: i32, %arg1: i32) -> (i32, i32) {
    %c0_i32 = arith.constant 0 : i32
    %c0_i32_0 = arith.constant 0 : i32
    %c0_i32_1 = arith.constant 0 : i32
    return %c0_i32, %c0_i32_0 : i32, i32
  }
  func.func @transform_21(%arg0: i32, %arg1: i32) -> (i32, i32) {
    %c0_i32 = arith.constant 0 : i32
    %c0_i32_0 = arith.constant 0 : i32
    %c0_i32_1 = arith.constant 0 : i32
    return %c0_i32, %c0_i32_0 : i32, i32
  }
  func.func @transform_22(%arg0: i32, %arg1: i32) -> (i32, i32, i32) {
    %c0_i32 = arith.constant 0 : i32
    %c0_i32_0 = arith.constant 0 : i32
    %c0_i32_1 = arith.constant 0 : i32
    return %arg0, %c0_i32, %c0_i32_0 : i32, i32, i32
  }
}

</mosaic_0001>

<bundles_post_ra>
// kernel: forward_pallas.1
= control target key start
LH: loop header
LB: loop body
LE: loop exit
PB: predicated region body
PF: predicated region fallthrough
CT: control target
= control target key end

     0   :  { %s4412_s0 = inlined_call_operand.vmem [shape: s32[2,1,8], index: 0, kind: input, shape index: {}]   ;;  %s4413_s1 = inlined_call_operand.vmem [shape: f32[2,8,32], index: 1, kind: input, shape index: {}]   ;;  %s4414_s2 = inlined_call_operand.vmem [shape: f32[1,32], index: 2, kind: input, shape index: {}]   ;;  %s4415_s3 = inlined_call_operand.vmem [shape: f32[1,32], index: 3, kind: input, shape index: {}]   ;;  %s4416_s4 = inlined_call_operand.vmem [shape: bf16[2,4,32,8], index: 4, kind: input, shape index: {}]   ;;  %s4417_s5 = inlined_call_operand.vmem [shape: bf16[2,4,32,8], index: 5, kind: input, shape index: {}]   ;;  %s4418_s6 = inlined_call_operand.vmem [shape: bf16[2,4,32,8], index: 6, kind: input, shape index: {}]   ;;  %s4419_s7 = inlined_call_operand.vmem [shape: f32[2,4,1,8], index: 7, kind: input, shape index: {}]   ;;  %s4420_s8 = inlined_call_operand.vmem [shape: f32[2,4,1,8], index: 8, kind: input, shape index: {}]   ;;  %s4421_s9 = inlined_call_operand.vmem [shape: f32[2,4,1,8], index: 9, kind: input, shape index: {}]   ;;  %s4422_s10 = inlined_call_operand.vmem [shape: bf16[2,4,8,32], index: 10, kind: input, shape index: {}]   ;;  %s4423_s11 = inlined_call_operand.vmem [shape: f32[2,1,32], index: 11, kind: input, shape index: {}]   ;;  %s4424_s12 = inlined_call_operand.vmem [shape: f32[2,1,32], index: 12, kind: input, shape index: {}]   ;;  %s4425_s13 = inlined_call_operand.vmem [shape: f32[2,1,32], index: 13, kind: input, shape index: {}]   ;;  %s4426_s14 = inlined_call_operand.vmem [shape: bf16[2,32,64], index: 14, kind: input, shape index: {}]   ;;  %s4427_s15 = inlined_call_operand.vmem [shape: f32[2,1,64], index: 15, kind: input, shape index: {}]   ;;  %s4428_s16 = inlined_call_operand.vmem [shape: bf16[2,64,32], index: 16, kind: input, shape index: {}]   ;;  %s4429_s17 = inlined_call_operand.vmem [shape: f32[2,1,32], index: 17, kind: input, shape index: {}]   ;;  %s4430_s18 = inlined_call_operand.vmem [shape: f32[2,1,32], index: 18, kind: input, shape index: {}]   ;;  %s4431_s19 = inlined_call_operand.vmem [shape: f32[2,1,32], index: 19, kind: input, shape index: {}]   ;;  %s4432_s20 = inlined_call_operand.vmem [shape: f32[1,32], index: 20, kind: input, shape index: {}]   ;;  %s4433_s21 = inlined_call_operand.<no memory space> [shape: f32[1,1], index: 21, kind: input, shape index: {}]   ;;  %s4434_s22 = inlined_call_operand.hbm [shape: f32[2,1,8], index: 22, kind: output, shape index: {}]  }
   0x1   :  { %4453 = sst [smem:[#allocation24_spill]] %s4412_s0  ;;  %v27_v0 = vstv %s4433_s21 }
   0x2   :  { %4454 = sst [smem:[#allocation25_spill]] %s4413_s1  ;;  %28 = vst [vmem:[#allocation3] sm:$0x1] %v27_v0 }
   0x3   :  { %4455 = sst [smem:[#allocation26_spill]] %s4414_s2 }
   0x4   :  { %4456 = sst [smem:[#allocation27_spill]] %s4415_s3 }
   0x5   :  { %4457 = sst [smem:[#allocation28_spill]] %s4416_s4 }
   0x6   :  { %4458 = sst [smem:[#allocation29_spill]] %s4417_s5 }
   0x7   :  { %4459 = sst [smem:[#allocation30_spill]] %s4418_s6 }
   0x8   :  { %4460 = sst [smem:[#allocation31_spill]] %s4419_s7 }
   0x9   :  { %4461 = sst [smem:[#allocation32_spill]] %s4420_s8 }
   0xa   :  { %4462 = sst [smem:[#allocation33_spill]] %s4421_s9 }
   0xb   :  { %4463 = sst [smem:[#allocation34_spill]] %s4422_s10 }
   0xc   :  { %4464 = sst [smem:[#allocation35_spill]] %s4426_s14 }
   0xd   :  { %4465 = sst [smem:[#allocation36_spill]] %s4431_s19 }
   0xe   :  { %4466 = sst [smem:[#allocation37_spill]] %s4432_s20 }
   0xf   :  { %4467 = sst [smem:[#allocation38_spill]] %s4434_s22 }
  0x10   :  { %29 = vsyncpa [#allocation5], 0 }
  0x11   :  { %31 = vsyncpa [#allocation5 + $0x1], 0  ;;  %s3906_s29 = smov 0   ;;  %s3908_s30 = smov 0  }
  0x12   :  { %s3910_s4 = smov 0   ;;  %s3912_s0 = smov 0  }
  0x13   :  { %s3914_s23 = smov 0   ;;  %s3916_s1 = smov 0  }
  0x14   :  { %s3918_s5 = smov 0   ;;  %s3920_s24 = smov 0  }
  0x15 LB: > { %4468 = sst [smem:[#allocation7_spill]] %s3751_s29  ;;  %s3131_s21 = sadd.s32 4294967295, %s3779_s24   ;;  %s3779_s24 = sphi %s3920_s24, %s37_s24   ;;  %s3775_s5 = sphi %s3918_s5, %s4528_s5   ;;  %s3771_s1 = sphi %s3916_s1, %s4527_s1   ;;  %s3767_s23 = sphi %s3914_s23, %s4526_s23   ;;  %s3763_s0 = sphi %s3912_s0, %s4525_s0   ;;  %s3759_s4 = sphi %s3910_s4, %s4524_s4   ;;  %s3755_s30 = sphi %s3908_s30, %s4530_s30   ;;  %s3751_s29 = sphi %s3906_s29, %s4529_s29  }
  0x16   : > { %4469 = sst [smem:[#allocation8_spill]] %s3759_s4  ;;  %s3132_s6 = sadd.s32 4294967294, %s3779_s24  }
  0x17   : > { %4470 = sst [smem:[#allocation9_spill]] %s3763_s0  ;;  %s46_s25 = sadd.s32 1, %s3771_s1 }
  0x18   : > { %4471 = sst [smem:[#allocation10_spill]] %s3767_s23  ;;  %p47_p0 = scmp.ge.s32.totalorder %s46_s25, 2 }
  0x19   : > { %4472 = sst [smem:[#allocation11_spill]] %s3771_s1  ;;  %s49_s26 = sadd.s32 1, %s3775_s5 }
  0x1a   : > { %4473 = sst [smem:[#allocation12_spill]] %s3775_s5  ;;  %p618_p1 = scmp.ne.s32.totalorder %s3759_s4, %s3755_s30 }
  0x1b   : > { %4474 = sst [smem:[#allocation13_spill]] %s3779_s24  ;;  %p619_p2 = scmp.eq.s32.totalorder %s3131_s21, 3 }
  0x1c   : > { %s4532_s25 = smov (%p47_p0, %s46_s25), 0  ;;  %s4534_s26 = smov (!%p47_p0, %s49_s26), %s3775_s5 }
  0x1d   : > { %4475 = sst [smem:[#allocation14_spill]] %s4532_s25  ;;  %p3955_p3 = por %p619_p2, %p618_p1 }
  0x1e   : > { %p624_p4 = scmp.ne.s32.totalorder %s3755_s30, %s3751_s29  ;;  %p51_p5 = scmp.ge.s32.totalorder %s4534_s26, 2 }
  0x1f   : > { %s4476_s2 = scalar_select %p3955_p3, 1, 0 }
  0x20   : > { %p625_p6 = scmp.eq.s32.totalorder %s3132_s6, 3  ;;  %p3135_p7 = scmp.ge.s32.totalorder %s3779_s24, 1 }
  0x21   : > { %4477 = sst [smem:[#allocation15_spill]] %s4476_s2  ;;  %p779_p8 = scmp.lt.s32.totalorder %s3779_s24, 5 }
  0x22   : > { %s4536_s26 = smov (%p51_p5, %s4534_s26), 0  ;;  %p3965_p9 = por %p625_p6, %p624_p4 }
  0x23   : > { %4478 = sst [smem:[#allocation16_spill]] %s4536_s26  ;;  %p780_p10 = pnand %p3135_p7, %p779_p8 }
  0x24   : > { %s4479_s27 = scalar_select %p3965_p9, 1, 0 }
  0x25   : > { %s605_s3 = ssub.s32 %s3775_s5, %s4536_s26  ;;  %s608_s28 = sadd.s32 1, %s3759_s4 }
  0x26   : > { %4480 = sst [smem:[#allocation17_spill]] %s4479_s27  ;;  %p606_p11 = scmp.eq.s32.totalorder %s605_s3, 0 }
  0x27   : > { %783 = sbr.rel (%p780_p10) target bundleno = 5610 (0x15ea), region = 108 }
  0x28   : > { %s3973_s21 = scalar_select %p606_p11, %s3759_s4, %s608_s28  }
  0x2a   : > { %4481 = sst [smem:[#allocation18_spill]] %s3973_s21 }
  0x2e   : > { %p905_p12 = scmp.lt.s32.totalorder %s3767_s23, 1  ;;  %p912_p13 = scmp.lt.s32.totalorder %s3763_s0, 1 }
  0x2f   : > { %s4484_s27 = sld [smem:[#allocation25_spill]]  ;;  %s4490_s7 = sld [smem:[#allocation31_spill]] }
  0x30   : > { %s3979_s25 = scalar_select %p905_p12, %s3767_s23, 1 }
  0x31   : > { %s3982_s1 = scalar_select %p912_p13, %s3763_s0, 1 }
  0x32   : > { %4482 = sst [smem:[#allocation19_spill]] %s3979_s25  ;;  %s3136_s21 = sshll.u32 %s3979_s25, 3 }
  0x33   : > { %s3288_s24 = sshll.u32 %s3982_s1, 6  ;;  %s4485_s23 = sld [smem:[#allocation28_spill]] }
  0x34   : > { %s4486_s0 = sld [smem:[#allocation29_spill]]  ;;  %s4488_s25 = sld [smem:[#allocation30_spill]] }
  0x35   : > { %s911_s29 = scalar_lea.vmem %s4484_s27, %s3136_s21  ;;  %s3143_s27 = sshll.u32 %s3982_s1, 2 }
  0x36   : > { %s4012_s22 = scalar_lea.vmem %s4490_s7, %s3143_s27  ;;  %s4492_s8 = sld [smem:[#allocation32_spill]] }
  0x37   : > { %4491 = sst [smem:[#allocation22_spill]] %s4012_s22  ;;  %s4493_s9 = sld [smem:[#allocation33_spill]] }
  0x38   : > { %s4494_s10 = sld [smem:[#allocation34_spill]]  ;;  %s4496_s14 = sld [smem:[#allocation35_spill]] }
  0x39   : > { %s3996_s5 = scalar_lea.vmem %s4485_s23, %s3288_s24  ;;  %s968_s7 = scalar_lea.vmem %s4429_s17, %s3982_s1 }
  0x3a   : > { %s4001_s19 = scalar_lea.vmem %s4486_s0, %s3288_s24  ;;  %s4006_s4 = scalar_lea.vmem %s4488_s25, %s3288_s24 }
  0x3b   : > { %4487 = sst [smem:[#allocation20_spill]] %s4001_s19  ;;  %s3291_s24 = sshll.u32 %s3982_s1, 4 }
  0x3c   : > { %4489 = sst [smem:[#allocation21_spill]] %s4006_s4  ;;  %s4017_s20 = scalar_lea.vmem %s4492_s8, %s3143_s27 }
  0x3d   : > { %s4022_s28 = scalar_lea.vmem %s4493_s9, %s3143_s27  ;;  %s971_s27 = scalar_lea.vmem %s4430_s18, %s3982_s1 }
  0x3e   : > { %s4028_s4 = scalar_lea.vmem %s4494_s10, %s3291_s24  ;;  %s4045_s9 = scalar_lea.vmem %s4496_s14, %s3291_s24 }
  0x3f   : > { %4495 = sst [smem:[#allocation23_spill]] %s4028_s4  ;;  %s3293_s4 = sshll.u32 %s3982_s1, 5 }
  0x40   : > { %s4059_s23 = scalar_lea.vmem %s4428_s16, %s3293_s4  ;;  %s4497_s0 = sld [smem:[#allocation36_spill]] }
  0x41   : > { %s4498_s25 = sand.u32 1, %s3755_s30   ;;  %s4499_s10 = sld [smem:[#allocation9_spill]] }
  0x42   : > { %s4071_s3 = scalar_lea.vmem [#allocation4], %s4498_s25 }
  0x46   : > { %s974_s14 = scalar_lea.vmem %s4497_s0, %s3982_s1 }
  0x47   : > { %p3152_p0 = scmp.ne.s32.totalorder %s4499_s10, 0 }
  0x48   : > { %v980_v1 = vld [vmem:[%s911_s29] sm:$0xff] (!%p3152_p0)  ;;  %vm983_vm0 = vcmask (!%p3152_p0), 261120   ;;  %s4500_s0 = sld [smem:[#allocation26_spill]] (!%p3152_p0)  ;;  %s4501_s6 = sld [smem:[#allocation27_spill]] (!%p3152_p0) }
  0x49   : > { %979 = sbr.rel (%p3152_p0) target bundleno = 387 (0x183), region = 112  ;;  %v984_v2 = vsel (!%p3152_p0), %vm983_vm0, %v980_v1, 0.0 }
  0x4a   : > { %985 = vadd.xlane.f32.xlu0 (!%p3152_p0), %v984_v2 }
  0x4e   : > { %v3153_v12 = vld [vmem:[%s4500_s0] ss:$0 sm:$0xff] (!%p3152_p0) }
  0x4f   : > { %v3154_v14 = vld [vmem:[%s4501_s6] ss:$0 sm:$0xff] (!%p3152_p0) }
  0xd7   : > { %v986_v3 = vpop.xlane.xlu0 %985 }
  0xd8   : > { %v988_v4 = vmul.f32 0.03125, %v986_v3 }
  0xda   : > { %v989_v5 = vsub.f32 %v980_v1, %v988_v4 }
  0xdc   : > { %v990_v6 = vmul.f32 %v989_v5, %v989_v5 }
  0xde   : > { %v991_v7 = vsel %vm983_vm0, %v990_v6, 0.0 }
  0xdf   : > { %992 = vadd.xlane.f32.xlu0 %v991_v7 }
 0x16c   : > { %v993_v8 = vpop.xlane.xlu0 %992 }
 0x16d   : > { %v994_v9 = vmul.f32 0.03125, %v993_v8 }
 0x16f   : > { %v995_v10 = vadd.f32 1e-07, %v994_v9 }
 0x171   : > { %3630 = vrsqrt.f32 %v995_v10 }
 0x17b   : > { %v3631_v11 = vpop.eup %3630 }
 0x17c   : > { %v997_v13 = vmul.f32 %v3631_v11, %v989_v5 }
 0x17e   : > { %v1004_v15 = vmul.f32 %v3153_v12, %v997_v13 }
 0x180   : > { %v1011_v16 = vadd.f32 %v3154_v14, %v1004_v15 }
 0x182   : > { %1012 = vst.msk [vmem:[#allocation2] sm:$0xff] %vm983_vm0, %v1011_v16 }
 0x183 PF: > { %s4502_s19 = sld [smem:[#allocation20_spill]]  ;;  %v3632_v17 = vld [vmem:[%s3996_s5] sm:$0xff]   ;;  %v3781_v18 = vmov 0.0   ;;  %v3634_v20 = vld [vmem:[%s3996_s5 + $0x8] sm:$0xff]   ;;  %vm3782_vm1 = vmmov 0   ;;  %s4503_s22 = sld [smem:[#allocation22_spill]]  ;;  %v1290_v38 = vlaneseq }
 0x184   : > { %3364 = vmatprep.subr.bf16.mxu0 %v3781_v18  ;;  %3372 = vmatprep.subr.bf16.mxu1 %v3781_v18  ;;  %vm1041_vm2 = vcmask 261120   ;;  %v3159_v24 = vld [vmem:[%s4017_s20] ss:$0 sm:$0xff]  ;;  %s4504_s8 = sld [smem:[#allocation21_spill]]  ;;  %vm1211_vm3 = vcmask 64512   ;;  %s4505_s2 = sld [smem:[#allocation19_spill]] }
 0x185   : > { %3365 = vmatpush3.bf16.msra.mxu0 %v3632_v17  ;;  %3368 = vmatprep.mubr.msk.bf16.mxu0 %vm3782_vm1, %v3781_v18  ;;  %s4506_s25 = sld [smem:[#allocation24_spill]]  ;;  %v4131_v40 = vshrl.u32 %v1290_v38, 7  ;;  %v3783_v42 = vmov -1e+09   ;;  %v3163_v58 = vld [vmem:[%s4022_s28] ss:$0 sm:$0xff]  ;;  %s4510_s21 = scalar_lea.vmem %s4424_s12, %s3982_s1 }
 0x186   : > { %3366 = vmatprep.subr.bf16.mxu0 %v3781_v18  ;;  %3376 = vmatprep.mubr.msk.bf16.mxu1 %vm3782_vm1, %v3781_v18  ;;  %vm1312_vm5 = vcmask 1043456   ;;  %v3638_v63 = vld [vmem:[%s3996_s5 + $0x10] sm:$0xff]   ;;  %v3640_v0 = vld [vmem:[%s3996_s5 + $0x18] sm:$0xff]   ;;  %v3184_v17 = vld [vmem:[%s4017_s20 + $0x1] ss:$0 sm:$0xff]  ;;  %s4508_s10 = sld [smem:[#allocation23_spill]] }
 0x187   : > { %v1292_v41 = vsub.s32 0, %v4131_v40  ;;  %vm2704_vm6 = vcmask 523264  }
 0x189   : > { %v3633_v19 = vld [vmem:[%s4502_s19] sm:$0xff]   ;;  %v3635_v21 = vld [vmem:[%s4502_s19 + $0x8] sm:$0xff]   ;;  %3367 = vmatpush3.bf16.msra.mxu0 %v3634_v20  ;;  %v3639_v5 = vld [vmem:[%s4502_s19 + $0x10] sm:$0xff]  }
 0x18a   : > { %3373 = vmatpush3.bf16.msra.mxu1 %v3633_v19  ;;  %v4095_v22 = vld [vmem:[#allocation2] sm:$0xff]  ;;  %3380 = vmatprep.subr.bf16.mxu0 %v3781_v18  ;;  %v3637_v37 = vld [vmem:[%s4504_s8 + $0x8] sm:$0xff]   ;;  %v3642_v1 = vld [vmem:[%s4504_s8 + $0x10] sm:$0xff]  }
 0x18b   : > { %3374 = vmatprep.subr.bf16.mxu1 %v3781_v18  ;;  %v4099_v23 = vpack.c.bf16 %v4095_v22, %v4095_v22  ;;  %v3155_v25 = vld [vmem:[%s4503_s22] ss:$0 sm:$0xff]  ;;  %s4507_s4 = scalar_lea.vmem %s4506_s25, %s4505_s2  ;;  %v3641_v7 = vld [vmem:[%s4502_s19 + $0x18] sm:$0xff]   ;;  %v3175_v19 = vld [vmem:[%s4503_s22 + $0x1] ss:$0 sm:$0xff]  ;;  %s4512_s2 = scalar_lea.vmem %s4427_s15, %s3982_s1 }
 0x18c   : > { %v3636_v36 = vld [vmem:[%s4504_s8] sm:$0xff]   ;;  %v3643_v8 = vld [vmem:[%s4504_s8 + $0x18] sm:$0xff]  }
 0x18d   : > { %3369 = vmatmul.mubr.msk.bf16.vlgmr.msra.gmra.mrb[0].mxu0 %vm1041_vm2, %v4099_v23  ;;  %v1013_v39 = vld [vmem:[%s4507_s4] sm:$0x1] }
 0x18e   : > { %3375 = vmatpush3.bf16.msra.mxu1 %v3635_v21  ;;  %3384 = vmatprep.mubr.msk.bf16.mxu0 %vm3782_vm1, %v3781_v18  ;;  %vm1014_vm4 = vcmp.gt.s32.totalorder %v1013_v39, 0 }
 0x18f   : > { %3388 = vmatprep.subr.mxu1 %v3781_v18  ;;  %3381 = vmatpush3.bf16.msra.mxu0 %v3636_v36  ;;  %v1015_v43 = vsel %vm1014_vm4, 0.0, %v3783_v42 }
 0x190   : > { %3382 = vmatprep.subr.bf16.mxu0 %v3781_v18  ;;  %v4136_v44 = vrot.slane %v1015_v43, %v1292_v41 }
 0x191   : > { %3377 = vmatmul.mubr.msk.bf16.vlgmr.msra.gmra.mrb[0].mxu1 %vm1041_vm2, %v4099_v23 }
 0x192   : > { %3390 = vmatprep.mubr.msk.f32.mxu1 %vm3782_vm1, %v3781_v18 }
 0x193   : > { %3383 = vmatpush3.bf16.msra.mxu0 %v3637_v37 }
 0x194   : > { %3399 = vmatprep.subr.bf16.mxu0 %v3781_v18 }
 0x196   : > { %3385 = vmatmul.mubr.msk.bf16.vlgmr.msra.gmra.mrb[4].mxu0 %vm1041_vm2, %v4099_v23 }
 0x197   : > { %3403 = vmatprep.mubr.msk.bf16.mxu0 %vm3782_vm1, %v3781_v18  ;;  %3400 = vmatpush3.bf16.msra.mxu0 %v3638_v63 }
 0x198   : > { %3401 = vmatprep.subr.bf16.mxu0 %v3781_v18 }
 0x19b   : > { %3402 = vmatpush3.bf16.msra.mxu0 %v3640_v0 }
 0x19c   : > { %3415 = vmatprep.subr.bf16.mxu0 %v3781_v18 }
 0x19e   : > { %3404 = vmatmul.mubr.msk.bf16.vlgmr.msra.gmra.mrb[8].mxu0 %vm1041_vm2, %v4099_v23 }
 0x19f   : > { %3419 = vmatprep.mubr.msk.bf16.mxu0 %vm3782_vm1, %v3781_v18  ;;  %3416 = vmatpush3.bf16.msra.mxu0 %v3642_v1 }
 0x1a0   : > { %3417 = vmatprep.subr.bf16.mxu0 %v3781_v18 }
 0x1a3   : > { %3418 = vmatpush3.bf16.msra.mxu0 %v3643_v8 }
 0x1a4   : > { %3423 = vmatprep.subr.mxu0 %v3781_v18 }
 0x1a6   : > { %3420 = vmatmul.mubr.msk.bf16.vlgmr.msra.gmra.mrb[12].mxu0 %vm1041_vm2, %v4099_v23 }
 0x1a7   : > { %3425 = vmatprep.mubr.msk.f32.mxu0 %vm3782_vm1, %v3781_v18 }
 0x260   : > { %v1079_v26 = vpop.f32.mrb[0].mxu0 }
 0x261   : > { %v3370_v28 = vpop.f32.mrb[1].mxu0  ;;  %v1080_v32 = vadd.f32 %v3155_v25, %v1079_v26 }
 0x262   : > { %v1082_v31 = vpop.f32.mrb[2].mxu0  ;;  %v3193_v28 = vld [vmem:[%s4022_s28 + $0x1] ss:$0 sm:$0xff] }
 0x263   : > { %v3371_v34 = vpop.f32.mrb[3].mxu0 }
 0x264   : > { %v1142_v27 = vpop.f32.mrb[0].mxu1 }
 0x265   : > { %v1143_v29 = vadd.f32 %v3159_v24, %v1142_v27  ;;  %v3378_v30 = vpop.f32.mrb[1].mxu1 }
 0x266   : > { %v1145_v33 = vpop.f32.mrb[2].mxu1 }
 0x267   : > { %v3379_v35 = vpop.f32.mrb[3].mxu1  ;;  %3389 = vmatpush3.xpose.msk.msra.mxu1 %vm1211_vm3, %v1143_v29 }
 0x268   : > { %3393 = vmatprep.subr.bf16.mxu1 %v3781_v18 }
 0x269   : > { %v1205_v55 = vpop.f32.mrb[4].mxu0 }
 0x26a   : > { %3391 = vmatmul.mubr.msk.f32.vlgmr.msra.gmra.mrb[4].mxu1 %vm1211_vm3, %v1080_v32  ;;  %v3386_v56 = vpop.f32.mrb[5].mxu0  ;;  %v1206_v60 = vadd.f32 %v3163_v58, %v1205_v55  ;;  %v3644_v55 = vld [vmem:[%s4502_s19 + $0x20] sm:$0xff]  }
 0x26b   : > { %3395 = vmatprep.mubr.msk.bf16.mxu1 %vm3782_vm1, %v3781_v18  ;;  %v1208_v57 = vpop.f32.mrb[6].mxu0 }
 0x26c   : > { %v3387_v59 = vpop.f32.mrb[7].mxu0  ;;  %v1308_v61 = vpack.c.bf16 %v1206_v60, %v1206_v60  ;;  %v3200_v57 = vld [vmem:[%s4508_s10 + $0x4] sm:$0xf] }
 0x26d   : > { %v1697_v58 = vsel %vm1312_vm5, %v3200_v57, 0  ;;  %v3645_v59 = vld [vmem:[%s4502_s19 + $0x28] sm:$0xff]   ;;  %v3653_v57 = vld [vmem:[%s3996_s5 + $0x38] sm:$0xff]  }
 0x26e   : > { %v1314_v62 = vsel %vm1312_vm5, %v1308_v61, 0  ;;  %v3646_v61 = vld [vmem:[%s3996_s5 + $0x20] sm:$0xff]  }
 0x26f   : > { %3394 = vmatpush3.bf16.msra.mxu1 %v1314_v62 }
 0x270   : > { %3407 = vmatprep.subr.bf16.mxu1 %v3781_v18 }
 0x271   : > { %v1417_v9 = vpop.f32.mrb[8].mxu0 }
 0x272   : > { %v3405_v10 = vpop.f32.mrb[9].mxu0  ;;  %v1418_v25 = vadd.f32 %v3175_v19, %v1417_v9  ;;  %v3208_v19 = vld [vmem:[%s4503_s22 + $0x2] ss:$0 sm:$0xff] }
 0x273   : > { %v1420_v11 = vpop.f32.mrb[10].mxu0 }
 0x274   : > { %v3406_v12 = vpop.f32.mrb[11].mxu0 }
 0x279   : > { %v1547_v29 = vpop.f32.mrb[12].mxu0 }
 0x27a   : > { %v1548_v30 = vadd.f32 %v3193_v28, %v1547_v29  ;;  %v3421_v31 = vpop.f32.mrb[13].mxu0  ;;  %v3649_v28 = vld [vmem:[%s4504_s8 + $0x28] sm:$0xff]  }
 0x27b   : > { %v1550_v32 = vpop.f32.mrb[14].mxu0 }
 0x27c   : > { %v1643_v33 = vpack.c.bf16 %v1548_v30, %v1548_v30  ;;  %v3422_v34 = vpop.f32.mrb[15].mxu0 }
 0x27e   : > { %v1648_v35 = vsel %vm1312_vm5, %v1643_v33, 0 }
 0x33d   : > { %v1284_v45 = vpop.f32.mrb[4].mxu1 }
 0x33e   : > { %v1288_v46 = vmul.f32 0.35355338, %v1284_v45  ;;  %v3392_v47 = vpop.f32.mrb[5].mxu1 }
 0x340   : > { %v1295_v48 = vadd.f32 %v4136_v44, %v1288_v46 }
 0x342   : > { %v1296_v49 = vsel %vm1211_vm3, %v1295_v48, -inf }
 0x343   : > { %1297 = vmax.xlane.f32.xlu0 %v1296_v49 }
 0x3d0   : > { %v1298_v50 = vpop.xlane.xlu0 %1297 }
 0x3d1   : > { %v1299_v51 = vsub.f32 %v1295_v48, %v1298_v50 }
 0x3d3   : > { %v1300_v52 = vmul.f32 1.442695, %v1299_v51  ;;  %v1357_v51 = vld [vmem:[%s4508_s10] sm:$0xf] }
 0x3d5   : > { %3662 = vpow2.f32 %v1300_v52 }
 0x3df   : > { %v3663_v53 = vpop.eup %3662 }
 0x3e0   : > { %v1302_v54 = vsel %vm1211_vm3, %v3663_v53, 0.0 }
 0x3e1   : > { %1303 = vadd.xlane.f32.xlu0 %v1302_v54  ;;  %v1743_v54 = vsel %vm1312_vm5, %v1357_v51, 0 }
 0x46e   : > { %v1304_v2 = vpop.xlane.xlu0 %1303 }
 0x46f   : > { %3664 = vrcp.f32 %v1304_v2  ;;  %v3647_v2 = vld [vmem:[%s3996_s5 + $0x28] sm:$0xff]  }
 0x479   : > { %v3665_v3 = vpop.eup %3664 }
 0x47a   : > { %v1306_v4 = vmul.f32 %v3665_v3, %v3663_v53 }
 0x47c   : > { %v1307_v6 = vpack.c.bf16 %v1306_v4, %v1306_v4 }
 0x47e   : > { %3396 = vmatmul.mubr.msk.bf16.vlgmr.msra.gmra.mrb[8].mxu1 %vm1211_vm3, %v1307_v6 }
 0x47f   : > { %3408 = vmatpush3.bf16.msra.mxu1 %v3639_v5  ;;  %3411 = vmatprep.mubr.msk.bf16.mxu1 %vm3782_vm1, %v3781_v18 }
 0x480   : > { %3409 = vmatprep.subr.bf16.mxu1 %v3781_v18 }
 0x483   : > { %3410 = vmatpush3.bf16.msra.mxu1 %v3641_v7  ;;  %v3217_v7 = vld [vmem:[%s4017_s20 + $0x2] ss:$0 sm:$0xff] }
 0x484   : > { %3434 = vmatprep.subr.bf16.mxu1 %v3781_v18 }
 0x486   : > { %3412 = vmatmul.mubr.msk.bf16.vlgmr.msra.gmra.mrb[12].mxu1 %vm1041_vm2, %v4099_v23 }
 0x487   : > { %3436 = vmatprep.mubr.msk.bf16.mxu1 %vm3782_vm1, %v3781_v18  ;;  %3435 = vmatpush3.bf16.msra.mxu1 %v1697_v58 }
 0x488   : > { %3446 = vmatprep.subr.bf16.mxu1 %v3781_v18 }
 0x551   : > { %v1350_v13 = vpop.f32.mrb[8].mxu1 }
 0x552   : > { %v3397_v14 = vpop.f32.mrb[9].mxu1  ;;  %v1356_v56 = vpack.c.bf16 %v1350_v13, %v1350_v13 }
 0x553   : > { %v1353_v15 = vpop.f32.mrb[10].mxu1 }
 0x554   : > { %v3398_v16 = vpop.f32.mrb[11].mxu1 }
 0x559   : > { %v1482_v20 = vpop.f32.mrb[12].mxu1 }
 0x55a   : > { %v1483_v21 = vadd.f32 %v3184_v17, %v1482_v20  ;;  %v3413_v24 = vpop.f32.mrb[13].mxu1 }
 0x55b   : > { %v1485_v26 = vpop.f32.mrb[14].mxu1 }
 0x55c   : > { %v3414_v27 = vpop.f32.mrb[15].mxu1  ;;  %3424 = vmatpush3.xpose.msk.msra.mxu0 %vm1211_vm3, %v1483_v21 }
 0x55d   : > { %3428 = vmatprep.subr.bf16.mxu0 %v3781_v18  ;;  %v3648_v27 = vld [vmem:[%s4504_s8 + $0x20] sm:$0xff]  }
 0x55f   : > { %3426 = vmatmul.mubr.msk.f32.vlgmr.msra.gmra.mrb[16].mxu0 %vm1211_vm3, %v1418_v25 }
 0x560   : > { %3430 = vmatprep.mubr.msk.bf16.mxu0 %vm3782_vm1, %v3781_v18  ;;  %3429 = vmatpush3.bf16.msra.mxu0 %v1648_v35 }
 0x561   : > { %3440 = vmatprep.subr.bf16.mxu0 %v3781_v18 }
 0x632   : > { %v1625_v36 = vpop.f32.mrb[16].mxu0 }
 0x633   : > { %v1629_v37 = vmul.f32 0.35355338, %v1625_v36  ;;  %v3427_v38 = vpop.f32.mrb[17].mxu0 }
 0x635   : > { %v1630_v39 = vadd.f32 %v1629_v37, %v4136_v44 }
 0x637   : > { %v1631_v42 = vsel %vm1211_vm3, %v1630_v39, -inf }
 0x638   : > { %1632 = vmax.xlane.f32.xlu1 %v1631_v42 }
 0x6c5   : > { %v1633_v43 = vpop.xlane.xlu1 %1632 }
 0x6c6   : > { %v1634_v45 = vsub.f32 %v1630_v39, %v1633_v43 }
 0x6c8   : > { %v1635_v46 = vmul.f32 1.442695, %v1634_v45  ;;  %v3226_v45 = vld [vmem:[%s4022_s28 + $0x2] ss:$0 sm:$0xff] }
 0x6ca   : > { %3666 = vpow2.f32 %v1635_v46 }
 0x6d4   : > { %v3667_v47 = vpop.eup %3666 }
 0x6d5   : > { %v1637_v48 = vsel %vm1211_vm3, %v3667_v47, 0.0 }
 0x6d6   : > { %1638 = vadd.xlane.f32.xlu1 %v1637_v48 }
 0x763   : > { %v1639_v49 = vpop.xlane.xlu1 %1638 }
 0x764   : > { %3668 = vrcp.f32 %v1639_v49 }
 0x76e   : > { %v3669_v50 = vpop.eup %3668 }
 0x76f   : > { %v1641_v52 = vmul.f32 %v3669_v50, %v3667_v47 }
 0x771   : > { %v1642_v53 = vpack.c.bf16 %v1641_v52, %v1641_v52 }
 0x773   : > { %3431 = vmatmul.mubr.msk.bf16.vlgmr.msra.gmra.mrb[20].mxu0 %vm1211_vm3, %v1642_v53 }
 0x774   : > { %3441 = vmatpush3.bf16.msra.mxu0 %v1743_v54  ;;  %3442 = vmatprep.mubr.msk.bf16.mxu0 %vm3782_vm1, %v3781_v18  ;;  %v3233_v54 = vld [vmem:[%s4508_s10 + $0x8] sm:$0xf] }
 0x775   : > { %3454 = vmatprep.subr.bf16.mxu0 %v3781_v18 }
 0x77b   : > { %3443 = vmatmul.mubr.msk.bf16.vlgmr.msra.gmra.mrb[24].mxu0 %vm1211_vm3, %v1356_v56  ;;  %v3651_v56 = vld [vmem:[%s3996_s5 + $0x30] sm:$0xff]   ;;  %s4514_s5 = sld [smem:[#allocation9_spill]] }
 0x77c   : > { %3455 = vmatpush3.bf16.msra.mxu0 %v3644_v55  ;;  %3458 = vmatprep.mubr.msk.bf16.mxu0 %vm3782_vm1, %v3781_v18  ;;  %v2124_v55 = vsel %vm1312_vm5, %v3233_v54, 0 }
 0x77d   : > { %3456 = vmatprep.subr.bf16.mxu0 %v3781_v18 }
 0x780   : > { %3457 = vmatpush3.bf16.msra.mxu0 %v3645_v59  ;;  %v3650_v59 = vld [vmem:[%s4502_s19 + $0x30] sm:$0xff]  }
 0x781   : > { %3470 = vmatprep.subr.mxu0 %v3781_v18  ;;  %p3282_p1 = scmp.ne.s32.totalorder %s4514_s5, 1 }
 0x782   : > { %vm3785_vm7 = vmmov (!%p3282_p1), 0   ;;  %vm2870_vm8 = vcmask (!%p3282_p1), 57344  }
 0x783   : > { %3459 = vmatmul.mubr.msk.bf16.vlgmr.msra.gmra.mrb[28].mxu0 %vm1041_vm2, %v4099_v23 }
 0x784   : > { %3472 = vmatprep.mubr.msk.f32.mxu0 %vm3782_vm1, %v3781_v18 }
 0x846   : > { %v1684_v60 = vpop.f32.mrb[20].mxu0 }
 0x847   : > { %v1690_v62 = vpack.c.bf16 %v1684_v60, %v1684_v60  ;;  %v3432_v63 = vpop.f32.mrb[21].mxu0 }
 0x848   : > { %v1687_v0 = vpop.f32.mrb[22].mxu0 }
 0x849   : > { %v3433_v1 = vpop.f32.mrb[23].mxu0  ;;  %3437 = vmatmul.mubr.msk.bf16.vlgmr.msra.gmra.mrb[16].mxu1 %vm1211_vm3, %v1690_v62  ;;  %v3652_v0 = vld [vmem:[%s4502_s19 + $0x38] sm:$0xff]  }
 0x84a   : > { %3447 = vmatpush3.bf16.msra.mxu1 %v3646_v61  ;;  %3450 = vmatprep.mubr.msk.bf16.mxu1 %vm3782_vm1, %v3781_v18 }
 0x84b   : > { %3448 = vmatprep.subr.bf16.mxu1 %v3781_v18 }
 0x84e   : > { %v1779_v3 = vpop.f32.mrb[24].mxu0  ;;  %3449 = vmatpush3.bf16.msra.mxu1 %v3647_v2 }
 0x84f   : > { %v3444_v4 = vpop.f32.mrb[25].mxu0  ;;  %3462 = vmatprep.subr.bf16.mxu1 %v3781_v18 }
 0x850   : > { %v1782_v5 = vpop.f32.mrb[26].mxu0 }
 0x851   : > { %v3445_v6 = vpop.f32.mrb[27].mxu0  ;;  %3451 = vmatmul.mubr.msk.bf16.vlgmr.msra.gmra.mrb[20].mxu1 %vm1041_vm2, %v4099_v23 }
 0x852   : > { %3466 = vmatprep.mubr.msk.bf16.mxu1 %vm3782_vm1, %v3781_v18  ;;  %3463 = vmatpush3.bf16.msra.mxu1 %v3648_v27 }
 0x853   : > { %3464 = vmatprep.subr.bf16.mxu1 %v3781_v18 }
 0x856   : > { %v1909_v8 = vpop.f32.mrb[28].mxu0  ;;  %3465 = vmatpush3.bf16.msra.mxu1 %v3649_v28 }
 0x857   : > { %v1910_v9 = vadd.f32 %v3217_v7, %v1909_v8  ;;  %v3460_v10 = vpop.f32.mrb[29].mxu0  ;;  %3475 = vmatprep.subr.bf16.mxu1 %v3781_v18 }
 0x858   : > { %v1912_v11 = vpop.f32.mrb[30].mxu0  ;;  %v3249_v10 = vld [vmem:[%s4017_s20 + $0x3] ss:$0 sm:$0xff] }
 0x859   : > { %v3461_v12 = vpop.f32.mrb[31].mxu0  ;;  %3471 = vmatpush3.xpose.msk.msra.mxu0 %vm1211_vm3, %v1910_v9  ;;  %3467 = vmatmul.mubr.msk.bf16.vlgmr.msra.gmra.mrb[24].mxu1 %vm1041_vm2, %v4099_v23  ;;  %v3240_v11 = vld [vmem:[%s4503_s22 + $0x3] ss:$0 sm:$0xff]  ;;  %s4511_s22 = scalar_lea.vmem %s4425_s13, %s3982_s1 }
 0x85a   : > { %3481 = vmatprep.subr.bf16.mxu0 %v3781_v18  ;;  %3477 = vmatprep.mubr.msk.bf16.mxu1 %vm3782_vm1, %v3781_v18 }
 0x91c   : > { %v1733_v13 = vpop.f32.mrb[16].mxu1 }
 0x91d   : > { %v4218_v14 = vadd.f32 %v1779_v3, %v1733_v13  ;;  %v3438_v15 = vpop.f32.mrb[17].mxu1 }
 0x91e   : > { %v1736_v16 = vpop.f32.mrb[18].mxu1 }
 0x91f   : > { %v3439_v17 = vpop.f32.mrb[19].mxu1 }
 0x924   : > { %v1844_v20 = vpop.f32.mrb[20].mxu1 }
 0x925   : > { %v1845_v21 = vadd.f32 %v3208_v19, %v1844_v20  ;;  %v3452_v24 = vpop.f32.mrb[21].mxu1  ;;  %v3655_v20 = vld [vmem:[%s4504_s8 + $0x38] sm:$0xff]  }
 0x926   : > { %v1847_v25 = vpop.f32.mrb[22].mxu1 }
 0x927   : > { %v3453_v26 = vpop.f32.mrb[23].mxu1  ;;  %3473 = vmatmul.mubr.msk.f32.vlgmr.msra.gmra.mrb[18].mxu0 %vm1211_vm3, %v1845_v21 }
 0x928   : > { %3483 = vmatprep.mubr.msk.bf16.mxu0 %vm3782_vm1, %v3781_v18  ;;  %3482 = vmatpush3.bf16.msra.mxu0 %v2124_v55 }
 0x929   : > { %3495 = vmatprep.subr.bf16.mxu0 %v3781_v18 }
 0x92c   : > { %v1974_v39 = vpop.f32.mrb[24].mxu1 }
 0x92d   : > { %v3468_v42 = vpop.f32.mrb[25].mxu1  ;;  %v1975_v47 = vadd.f32 %v3226_v45, %v1974_v39 }
 0x92e   : > { %v1977_v43 = vpop.f32.mrb[26].mxu1 }
 0x92f   : > { %v3469_v46 = vpop.f32.mrb[27].mxu1  ;;  %v2070_v48 = vpack.c.bf16 %v1975_v47, %v1975_v47 }
 0x930   : > { %v3265_v46 = vld [vmem:[%s4508_s10 + $0xc] sm:$0xf] }
 0x931   : > { %v2075_v49 = vsel %vm1312_vm5, %v2070_v48, 0  ;;  %v2506_v47 = vsel %vm1312_vm5, %v3265_v46, 0 }
 0x932   : > { %3476 = vmatpush3.bf16.msra.mxu1 %v2075_v49 }
 0x933   : > { %3487 = vmatprep.subr.bf16.mxu1 %v3781_v18 }
 0x9fa   : > { %v2052_v29 = vpop.f32.mrb[18].mxu0 }
 0x9fb   : > { %v2056_v30 = vmul.f32 0.35355338, %v2052_v29  ;;  %v3474_v31 = vpop.f32.mrb[19].mxu0 }
 0x9fd   : > { %v2057_v32 = vadd.f32 %v2056_v30, %v4136_v44 }
 0x9ff   : > { %v2058_v33 = vsel %vm1211_vm3, %v2057_v32, -inf }
 0xa00   : > { %2059 = vmax.xlane.f32.xlu0 %v2058_v33 }
 0xa8d   : > { %v2060_v34 = vpop.xlane.xlu0 %2059 }
 0xa8e   : > { %v2061_v35 = vsub.f32 %v2057_v32, %v2060_v34 }
 0xa90   : > { %v2062_v36 = vmul.f32 1.442695, %v2061_v35  ;;  %v3258_v35 = vld [vmem:[%s4022_s28 + $0x3] ss:$0 sm:$0xff]  ;;  %s4509_s28 = scalar_lea.vmem %s4423_s11, %s3982_s1 }
 0xa91   : > { %v3267_v54 = vld [vmem:[%s4509_s28] ss:$0 sm:$0xff]  ;;  %s4515_s28 = sld [smem:[#allocation37_spill]] (!%p3282_p1) }
 0xa92   : > { %3670 = vpow2.f32 %v2062_v36 }
 0xa9c   : > { %v3671_v37 = vpop.eup %3670 }
 0xa9d   : > { %v2064_v38 = vsel %vm1211_vm3, %v3671_v37, 0.0 }
 0xa9e   : > { %2065 = vadd.xlane.f32.xlu1 %v2064_v38 }
 0xb2b   : > { %v2066_v50 = vpop.xlane.xlu1 %2065 }
 0xb2c   : > { %3672 = vrcp.f32 %v2066_v50 }
 0xb36   : > { %v3673_v51 = vpop.eup %3672 }
 0xb37   : > { %v2068_v52 = vmul.f32 %v3673_v51, %v3671_v37 }
 0xb39   : > { %v2069_v53 = vpack.c.bf16 %v2068_v52, %v2068_v52 }
 0xb3b   : > { %3478 = vmatmul.mubr.msk.bf16.vlgmr.msra.gmra.mrb[28].mxu1 %vm1211_vm3, %v2069_v53 }
 0xb3c   : > { %3491 = vmatprep.mubr.msk.bf16.mxu1 %vm3782_vm1, %v3781_v18  ;;  %3488 = vmatpush3.bf16.msra.mxu1 %v3651_v56 }
 0xb3d   : > { %3489 = vmatprep.subr.bf16.mxu1 %v3781_v18 }
 0xb40   : > { %3490 = vmatpush3.bf16.msra.mxu1 %v3653_v57 }
 0xb41   : > { %3503 = vmatprep.subr.bf16.mxu1 %v3781_v18 }
 0xb43   : > { %3492 = vmatmul.mubr.msk.bf16.vlgmr.msra.gmra.mrb[32].mxu1 %vm1041_vm2, %v4099_v23 }
 0xb44   : > { %3507 = vmatprep.mubr.msk.bf16.mxu1 %vm3782_vm1, %v3781_v18 }
 0xc0e   : > { %v2111_v58 = vpop.f32.mrb[28].mxu1 }
 0xc0f   : > { %v2117_v60 = vpack.c.bf16 %v2111_v58, %v2111_v58  ;;  %v3479_v61 = vpop.f32.mrb[29].mxu1 }
 0xc10   : > { %v2114_v62 = vpop.f32.mrb[30].mxu1 }
 0xc11   : > { %v3480_v63 = vpop.f32.mrb[31].mxu1  ;;  %3484 = vmatmul.mubr.msk.bf16.vlgmr.msra.gmra.mrb[32].mxu0 %vm1211_vm3, %v2117_v60 }
 0xc12   : > { %3496 = vmatpush3.bf16.msra.mxu0 %v3650_v59  ;;  %3499 = vmatprep.mubr.msk.bf16.mxu0 %vm3782_vm1, %v3781_v18 }
 0xc13   : > { %3497 = vmatprep.subr.bf16.mxu0 %v3781_v18 }
 0xc16   : > { %3498 = vmatpush3.bf16.msra.mxu0 %v3652_v0  ;;  %v2226_v1 = vpop.f32.mrb[32].mxu1 }
 0xc17   : > { %3511 = vmatprep.subr.mxu0 %v3781_v18  ;;  %v3493_v2 = vpop.f32.mrb[33].mxu1  ;;  %v2227_v17 = vadd.f32 %v3240_v11, %v2226_v1 }
 0xc18   : > { %v2229_v3 = vpop.f32.mrb[34].mxu1 }
 0xc19   : > { %3500 = vmatmul.mubr.msk.bf16.vlgmr.msra.gmra.mrb[36].mxu0 %vm1041_vm2, %v4099_v23  ;;  %v3494_v4 = vpop.f32.mrb[35].mxu1  ;;  %v3656_v3 = vld [vmem:[%s4045_s9] sm:$0xff]  }
 0xc1a   : > { %3513 = vmatprep.mubr.msk.f32.mxu0 %vm3782_vm1, %v3781_v18  ;;  %v3657_v4 = vld [vmem:[%s4045_s9 + $0x8] sm:$0xff]  }
 0xce4   : > { %v2160_v5 = vpop.f32.mrb[32].mxu0 }
 0xce5   : > { %v4264_v6 = vadd.f32 %v2160_v5, %v4218_v14  ;;  %v3485_v7 = vpop.f32.mrb[33].mxu0  ;;  %v3654_v14 = vld [vmem:[%s4504_s8 + $0x30] sm:$0xff]  }
 0xce6   : > { %v2163_v8 = vpop.f32.mrb[34].mxu0  ;;  %3504 = vmatpush3.bf16.msra.mxu1 %v3654_v14  ;;  %v3270_v14 = vld [vmem:[%s4512_s2] ss:$0 sm:$0xff] }
 0xce7   : > { %v3486_v9 = vpop.f32.mrb[35].mxu0  ;;  %3505 = vmatprep.subr.bf16.mxu1 %v3781_v18  ;;  %v3268_v8 = vld [vmem:[%s4510_s21] ss:$0 sm:$0xff] }
 0xcea   : > { %3506 = vmatpush3.bf16.msra.mxu1 %v3655_v20 }
 0xceb   : > { %3522 = vmatprep.subr.bf16.mxu1 %v3781_v18 }
 0xcec   : > { %v2291_v12 = vpop.f32.mrb[36].mxu0 }
 0xced   : > { %v2292_v13 = vadd.f32 %v3249_v10, %v2291_v12  ;;  %v3501_v15 = vpop.f32.mrb[37].mxu0  ;;  %3508 = vmatmul.mubr.msk.bf16.vlgmr.msra.gmra.mrb[36].mxu1 %vm1041_vm2, %v4099_v23  ;;  %v3269_v10 = vld [vmem:[%s4511_s22] ss:$0 sm:$0xff] }
 0xcee   : > { %v2294_v16 = vpop.f32.mrb[38].mxu0  ;;  %3524 = vmatprep.mubr.msk.bf16.mxu1 %vm3782_vm1, %v3781_v18  ;;  %3523 = vmatpush3.bf16.msra.mxu1 %v2506_v47  ;;  %v3658_v15 = vld [vmem:[%s4059_s23] sm:$0xff]  }
 0xcef   : > { %v3502_v19 = vpop.f32.mrb[39].mxu0  ;;  %3512 = vmatpush3.xpose.msk.msra.mxu0 %vm1211_vm3, %v2292_v13  ;;  %3536 = vmatprep.subr.bf16.mxu1 %v3781_v18  ;;  %v3659_v16 = vld [vmem:[%s4059_s23 + $0x8] sm:$0xff]  }
 0xcf0   : > { %3516 = vmatprep.subr.bf16.mxu0 %v3781_v18  ;;  %v3661_v19 = vld [vmem:[%s4059_s23 + $0x18] sm:$0xff]  }
 0xcf2   : > { %3514 = vmatmul.mubr.msk.f32.vlgmr.msra.gmra.mrb[40].mxu0 %vm1211_vm3, %v2227_v17  ;;  %v3660_v17 = vld [vmem:[%s4059_s23 + $0x10] sm:$0xff]  }
 0xcf3   : > { %3518 = vmatprep.mubr.msk.bf16.mxu0 %vm3782_vm1, %v3781_v18 }
 0xdc0   : > { %v2356_v23 = vpop.f32.mrb[36].mxu1 }
 0xdc1   : > { %v3509_v33 = vpop.f32.mrb[37].mxu1  ;;  %v2357_v37 = vadd.f32 %v3258_v35, %v2356_v23  ;;  %v3274_v35 = vld [vmem:[%s968_s7] ss:$0 sm:$0xff] }
 0xdc2   : > { %v2359_v34 = vpop.f32.mrb[38].mxu1 }
 0xdc3   : > { %v3510_v36 = vpop.f32.mrb[39].mxu1  ;;  %v2452_v38 = vpack.c.bf16 %v2357_v37, %v2357_v37 }
 0xdc5   : > { %v2434_v21 = vpop.f32.mrb[40].mxu0 }
 0xdc6   : > { %v2438_v24 = vmul.f32 0.35355338, %v2434_v21  ;;  %v3515_v25 = vpop.f32.mrb[41].mxu0 }
 0xdc8   : > { %v2439_v26 = vadd.f32 %v2438_v24, %v4136_v44  ;;  %v2457_v44 = vsel %vm1312_vm5, %v2452_v38, 0 }
 0xdc9   : > { %3517 = vmatpush3.bf16.msra.mxu0 %v2457_v44 }
 0xdca   : > { %v2440_v27 = vsel %vm1211_vm3, %v2439_v26, -inf  ;;  %3528 = vmatprep.subr.bf16.mxu0 %v3781_v18 }
 0xdcb   : > { %2441 = vmax.xlane.f32.xlu0 %v2440_v27 }
 0xe58   : > { %v2442_v28 = vpop.xlane.xlu0 %2441 }
 0xe59   : > { %v2443_v29 = vsub.f32 %v2439_v26, %v2442_v28 }
 0xe5b   : > { %v2444_v30 = vmul.f32 1.442695, %v2443_v29 }
 0xe5d   : > { %3674 = vpow2.f32 %v2444_v30 }
 0xe67   : > { %v3675_v31 = vpop.eup %3674 }
 0xe68   : > { %v2446_v32 = vsel %vm1211_vm3, %v3675_v31, 0.0 }
 0xe69   : > { %2447 = vadd.xlane.f32.xlu1 %v2446_v32 }
 0xef6   : > { %v2448_v39 = vpop.xlane.xlu1 %2447 }
 0xef7   : > { %3676 = vrcp.f32 %v2448_v39 }
 0xf01   : > { %v3677_v42 = vpop.eup %3676 }
 0xf02   : > { %v2450_v43 = vmul.f32 %v3677_v42, %v3675_v31 }
 0xf04   : > { %v2451_v45 = vpack.c.bf16 %v2450_v43, %v2450_v43 }
 0xf06   : > { %3519 = vmatmul.mubr.msk.bf16.vlgmr.msra.gmra.mrb[44].mxu0 %vm1211_vm3, %v2451_v45 }
 0xf07   : > { %3532 = vmatprep.mubr.msk.bf16.mxu0 %vm3782_vm1, %v3781_v18  ;;  %3529 = vmatpush3.bf16.msra.mxu0 %v3656_v3 }
 0xf08   : > { %3530 = vmatprep.subr.bf16.mxu0 %v3781_v18 }
 0xf0b   : > { %3531 = vmatpush3.bf16.msra.mxu0 %v3657_v4 }
 0xfd9   : > { %v2493_v48 = vpop.f32.mrb[44].mxu0 }
 0xfda   : > { %v2499_v49 = vpack.c.bf16 %v2493_v48, %v2493_v48  ;;  %v3520_v50 = vpop.f32.mrb[45].mxu0 }
 0xfdb   : > { %v2496_v51 = vpop.f32.mrb[46].mxu0 }
 0xfdc   : > { %v3521_v52 = vpop.f32.mrb[47].mxu0  ;;  %3525 = vmatmul.mubr.msk.bf16.vlgmr.msra.gmra.mrb[40].mxu1 %vm1211_vm3, %v2499_v49 }
 0xfdd   : > { %3544 = vmatprep.mubr.msk.bf16.mxu1 %vm3782_vm1, %v3781_v18  ;;  %3537 = vmatpush3.bf16.msra.mxu1 %v3658_v15 }
 0xfde   : > { %3538 = vmatprep.subr.bf16.mxu1 %v3781_v18 }
 0xfe1   : > { %3539 = vmatpush3.bf16.msra.mxu1 %v3659_v16 }
 0xfe2   : > { %3540 = vmatprep.subr.bf16.mxu1 %v3781_v18 }
 0xfe5   : > { %3541 = vmatpush3.bf16.msra.mxu1 %v3660_v17 }
 0xfe6   : > { %3542 = vmatprep.subr.bf16.mxu1 %v3781_v18 }
 0xfe9   : > { %3543 = vmatpush3.bf16.msra.mxu1 %v3661_v19 }
0x10af   : > { %v2542_v53 = vpop.f32.mrb[40].mxu1 }
0x10b0   : > { %v2548_v55 = vadd.f32 %v2542_v53, %v4264_v6  ;;  %v3526_v56 = vpop.f32.mrb[41].mxu1 }
0x10b1   : > { %v2545_v57 = vpop.f32.mrb[42].mxu1  ;;  %v3281_v56 = vld [vmem:[%s974_s14] ss:$0 sm:$0xff] }
0x10b2   : > { %v2556_v58 = vadd.f32 %v3267_v54, %v2548_v55  ;;  %v3527_v59 = vpop.f32.mrb[43].mxu1  ;;  %v3280_v54 = vld [vmem:[%s971_s27] ss:$0 sm:$0xff] }
0x10b3   : > { %v3784_v59 = vmov (!%p3282_p1), 0.0  }
0x10b4   : > { %v2557_v60 = vadd.f32 %v2556_v58, %v4095_v22  ;;  %3548 = vmatprep.subr.mxu0 (!%p3282_p1), %v3784_v59 }
0x10b6   : > { %v2560_v61 = vsel %vm1041_vm2, %v2557_v60, 0.0 }
0x10b7   : > { %2561 = vadd.xlane.f32.xlu0 %v2560_v61  ;;  %v2783_v61 = vld [vmem:[%s4515_s28] sm:$0x1] (!%p3282_p1) }
0x1144   : > { %v2562_v62 = vpop.xlane.xlu0 %2561 }
0x1145   : > { %v2564_v63 = vmul.f32 0.03125, %v2562_v62  ;;  %v3786_v62 = vmov (!%p3282_p1), 0  }
0x1146   : > { %3684 = vset.pattern.permute.xlu0 (!%p3282_p1), %v3786_v62 }
0x1147   : > { %v2565_v0 = vsub.f32 %v2557_v60, %v2564_v63  ;;  %v2784_v60 = vld [vmem:[#allocation3] sm:$0x1] (!%p3282_p1) }
0x1149   : > { %v2566_v1 = vmul.f32 %v2565_v0, %v2565_v0 }
0x114b   : > { %v2567_v2 = vsel %vm1041_vm2, %v2566_v1, 0.0 }
0x114c   : > { %2568 = vadd.xlane.f32.xlu1 %v2567_v2 }
0x11d9   : > { %v2569_v22 = vpop.xlane.xlu1 %2568 }
0x11da   : > { %v2570_v5 = vmul.f32 0.03125, %v2569_v22 }
0x11dc   : > { %v2571_v6 = vadd.f32 1e-07, %v2570_v5 }
0x11de   : > { %3678 = vrsqrt.f32 %v2571_v6 }
0x11e8   : > { %v3679_v7 = vpop.eup %3678 }
0x11e9   : > { %v2573_v9 = vmul.f32 %v3679_v7, %v2565_v0 }
0x11eb   : > { %v2580_v11 = vmul.f32 %v3268_v8, %v2573_v9 }
0x11ed   : > { %v2587_v12 = vadd.f32 %v3269_v10, %v2580_v11 }
0x11ef   : > { %v2588_v13 = vpack.c.bf16 %v2587_v12, %v2587_v12 }
0x11f1   : > { %3533 = vmatmul.mubr.msk.bf16.vlgmr.msra.gmra.mrb[48].mxu0 %vm1041_vm2, %v2588_v13 }
0x11f2   : > { %3550 = vmatprep.mubr.msk.f32.mxu0 (!%p3282_p1), %vm3785_vm7, %v3784_v59 }
0x12c4   : > { %v2649_v20 = vpop.f32.mrb[48].mxu0 }
0x12c5   : > { %v2650_v21 = vadd.f32 %v3270_v14, %v2649_v20  ;;  %v3534_v24 = vpop.f32.mrb[49].mxu0 }
0x12c6   : > { %v2652_v25 = vpop.f32.mrb[50].mxu0 }
0x12c7   : > { %v2655_v26 = vmul.f32 %v2650_v21, %v2650_v21  ;;  %v3535_v27 = vpop.f32.mrb[51].mxu0 }
0x12c9   : > { %v2656_v28 = vmul.f32 %v2655_v26, %v2650_v21 }
0x12cb   : > { %v2657_v29 = vmul.f32 0.044715, %v2656_v28 }
0x12cd   : > { %v2658_v30 = vadd.f32 %v2657_v29, %v2650_v21 }
0x12cf   : > { %v2659_v31 = vmul.f32 0.7978846, %v2658_v30 }
0x12d1   : > { %3680 = vtanh.f32 %v2659_v31 }
0x12db   : > { %v3681_v18 = vpop.eup %3680 }
0x12dc   : > { %v2661_v32 = vadd.f32 1.0, %v3681_v18 }
0x12de   : > { %v2662_v23 = vmul.f32 0.5, %v2661_v32 }
0x12e0   : > { %v2663_v33 = vmul.f32 %v2662_v23, %v2650_v21 }
0x12e2   : > { %v2664_v34 = vpack.c.bf16 %v2663_v33, %v2663_v33 }
0x12e4   : > { %3545 = vmatmul.mubr.msk.bf16.vlgmr.msra.gmra.mrb[44].mxu1 %vm2704_vm6, %v2664_v34 }
0x13b7   : > { %v2742_v36 = vpop.f32.mrb[44].mxu1 }
0x13b8   : > { %v2743_v37 = vadd.f32 %v3274_v35, %v2742_v36  ;;  %v3546_v38 = vpop.f32.mrb[45].mxu1 }
0x13b9   : > { %v2745_v44 = vpop.f32.mrb[46].mxu1 }
0x13ba   : > { %v3547_v39 = vpop.f32.mrb[47].mxu1  ;;  %v2748_v42 = vadd.f32 %v2743_v37, %v2587_v12 }
0x13bc   : > { %v2751_v43 = vsel %vm1041_vm2, %v2748_v42, 0.0 }
0x13bd   : > { %2752 = vadd.xlane.f32.xlu0 %v2751_v43 }
0x13d3   : > { %2787 = vperm.xlu0 (!%p3282_p1), %3684, %v2784_v60  }
0x144a   : > { %v2753_v45 = vpop.xlane.xlu0 %2752 }
0x144b   : > { %v2754_v46 = vmul.f32 0.03125, %v2753_v45 }
0x144d   : > { %v2755_v47 = vsub.f32 %v2748_v42, %v2754_v46 }
0x144f   : > { %v2756_v48 = vmul.f32 %v2755_v47, %v2755_v47 }
0x1451   : > { %v2757_v49 = vsel %vm1041_vm2, %v2756_v48, 0.0 }
0x1452   : > { %2758 = vadd.xlane.f32.xlu1 %v2757_v49  ;;  %v2788_v63 = vpop.permute.xlu0 (!%p3282_p1), %2787 }
0x1453   : > { %v2793_v0 = vrot.slane (!%p3282_p1), %v2788_v63, %v1292_v41 }
0x14df   : > { %v2759_v50 = vpop.xlane.xlu1 %2758 }
0x14e0   : > { %v2760_v51 = vmul.f32 0.03125, %v2759_v50 }
0x14e2   : > { %v2761_v52 = vadd.f32 1e-07, %v2760_v51 }
0x14e4   : > { %3682 = vrsqrt.f32 %v2761_v52 }
0x14ee   : > { %v3683_v53 = vpop.eup %3682 }
0x14ef   : > { %v2763_v55 = vmul.f32 %v3683_v53, %v2755_v47  ;;  %2782 = sbr.rel (%p3282_p1) target bundleno = 5583 (0x15cf), region = 116 }
0x14f1   : > { %v2770_v57 = vmul.f32 %v3280_v54, %v2763_v55 }
0x14f3   : > { %v2777_v58 = vadd.f32 %v3281_v56, %v2770_v57 }
0x14f5   : > { %2778 = vst.msk [vmem:[#allocation2] sm:$0xff] %vm1041_vm2, %v2777_v58  ;;  %3549 = vmatpush3.xpose.msk.msra.mxu0 (!%p3282_p1), %vm1041_vm2, %v2777_v58 }
0x14f8   : > { %3551 = vmatmul.mubr.msk.f32.vlgmr.msra.gmra.mrb[0].mxu0 %vm1041_vm2, %v2783_v61 }
0x15cb   : > { %v2866_v1 = vpop.f32.mrb[0].mxu0 }
0x15cc   : > { %v2867_v2 = vadd.f32 %v2866_v1, %v2793_v0  ;;  %v3552_v3 = vpop.f32.mrb[1].mxu0 }
0x15ce   : > { %2871 = vst.msk [vmem:[%s4071_s3] sm:$0x1] %vm2870_vm8, %v2867_v2 }
0x15cf PF: > { %s4516_s14 = sld [smem:[#allocation10_spill]]  ;;  %s4518_s6 = sld [smem:[#allocation38_spill]] }
0x15d0   : > { %s2885_s22 = sshll.u32 %s4071_s3, 4  ;;  %s4519_s9 = sand.u32 1, %s3755_s30   ;;  %s2886_s22 = int_to_ptr.vmem [resolvable:$true] %s2885_s22 }
0x15d1   : > { %s2873_s8 = scalar_lea.sflag [#allocation5], %s4519_s9  ;;  %s3685_s2 = scalar_lea.vmem %s2886_s22, 16 }
0x15d2   : > { %p3686_p2 = scmp.ne.s32.totalorder %s2886_s22, %s3685_s2  ;;  %s3787_s23 = smov [#allocation4]  }
0x15d3   : > { %s3689_s24 = sshll.u32 %s3787_s23, 4  ;;  %s3690_s24 = int_to_ptr.vmem [resolvable:$false] %s3689_s24 }
0x15d4   : > { %p3687_p4 = pnand %p3686_p2, %p3955_p3  ;;  %s3691_s7 = scalar_lea.vmem %s3690_s24, 32 }
0x15d5   : > { %s3285_s0 = sshll.u32 %s4516_s14, 4  ;;  %p3692_p6 = scmp.lt.s32.totalorder %s2886_s22, %s3690_s24 }
0x15d6   : > { %s4362_s19 = scalar_lea.hbm %s4518_s6, %s3285_s0  ;;  %p3688_p5 = pneg %p3687_p4 }
0x15d7   : > { %p3693_p7 = scmp.lt.s32.totalorder %s3691_s7, %s3685_s2 }
0x15d9   : > { %p3694_p8 = por %p3693_p7, %p3692_p6 }
0x15db   : > { %p3695_p10 = pnand %p3694_p8, %p3688_p5 }
0x15dd   : > { %3698 = shalt.err (!%p3695_p10)
}
0x15de   : > { %s3699_s3 = scalar_lea.hbm %s4362_s19, 16  ;;  %s3703_s4 = scalar_lea.hbm %s4518_s6, 32 }
0x15df   : > { %p3700_p11 = scmp.ne.s32.totalorder %s4362_s19, %s3699_s3  ;;  %p3704_p0 = scmp.lt.u32.totalorder %s4362_s19, %s4518_s6 }
0x15e0   : > { %p3705_p1 = scmp.lt.u32.totalorder %s3703_s4, %s3699_s3  ;;  %p3707_p4 = scmp.lt.u32.totalorder %s3699_s3, %s4362_s19 }
0x15e1   : > { %p3701_p12 = pnand %p3700_p11, %p3955_p3 }
0x15e2   : > { %p3706_p2 = por %p3705_p1, %p3704_p0 }
0x15e3   : > { %p3702_p13 = pneg %p3701_p12 }
0x15e4   : > { %p3708_p5 = por %p3707_p4, %p3706_p2 }
0x15e6   : > { %p3709_p6 = pnand %p3708_p5, %p3702_p13 }
0x15e8   : > { %3712 = shalt.err (!%p3709_p6)
}
0x15e9   : > { %3553 = dma.vmem_to_hbm [thread:$0]  (%p3955_p3), %s2886_s22, 16, %s4362_s19, %s2873_s8  }
0x15ea PF: > { %s4520_s27 = sld [smem:[#allocation13_spill]]  ;;  %s4521_s20 = sld [smem:[#allocation7_spill]] }
0x15f0   : > { %p3559_p7 = scmp.ge.s32.totalorder %s4520_s27, 2  ;;  %s2897_s14 = sand.u32 1, %s4521_s20  }
0x15f1   : > { %s2898_s0 = scalar_lea.sflag [#allocation5], %s2897_s14 }
0x15f2   : > { %p3556_p8 = pnand %p3559_p7, %p3965_p9 }
0x15f4   : > { %3746 = dma.done.wait (!%p3556_p8), %s2898_s0, 16  }
0x15f5   : > { %3748 = vsyncadd (!%p3556_p8), %s2898_s0, 4294967280  ;;  %s37_s24 = sadd.s32 1, %s4520_s27   ;;  %s4523_s21 = sld [smem:[#allocation8_spill]] }
0x15f6   : > { %p34_p10 = scmp.ge.s32.totalorder %s37_s24, 6   ;;  %s4524_s4 = sld [smem:[#allocation18_spill]] }
0x15f7   : > { %s4525_s0 = sld [smem:[#allocation11_spill]]  ;;  %s4526_s23 = sld [smem:[#allocation12_spill]] }
0x15f8   : > { %s4527_s1 = sld [smem:[#allocation14_spill]]  ;;  %s4528_s5 = sld [smem:[#allocation16_spill]] }
0x15f9   : > { %s4529_s29 = smov %s3755_s30  ;;  %36 = sbr.rel (!%p34_p10) target bundleno = 21 (0x15), region = 223 }
0x15fb   : > { %s4530_s30 = smov %s4523_s21 }
0x1600   :  { %2902 = vsyncpa [#allocation5], 1 }
0x1601   :  { %2904 = vsyncpa [#allocation5 + $0x1], 1 }

</bundles_post_ra>
